<compile_context>
chip_gen: v6e
topology: v6e:2x2x1
jax: 0.10.0
libtpu: 0.0.40
codegen_flags: <defaults>
</compile_context>

<pallas_src>
import functools
import math

import jax
import jax.numpy as jnp
from jax.experimental import pallas as pl
from jax.experimental.pallas import tpu as pltpu


_VMEM_LIMIT = 32 * 1024 * 1024  # scoped-VMEM cap, safe on v5e/v6e/v7x


@functools.lru_cache(maxsize=None)
def _default_row_tile():
    """512-row tiles on 128 MiB VMEM parts (v5e/v6e), 256 on v7x (64 MiB)."""
    try:
        info = pltpu.get_tpu_info()
        vmem = getattr(info, "vmem_capacity_bytes", 0) or 0
        if vmem >= 96 * 1024 * 1024:
            return 512
    except Exception:
        pass
    return 256


def _row_plan(n, target):
    """Return (tile, padded_extent) so that padded_extent % tile == 0."""
    if n <= target:
        return n, n
    pad = (-n) % target
    return target, n + pad


def _pad_axis0(x, new_n):
    n = x.shape[0]
    if new_n == n:
        return x
    pads = [(0, new_n - n)] + [(0, 0)] * (x.ndim - 1)
    return jnp.pad(x, pads)


# -----------------------------------------------------------------------------
# Row-tiled projections (weights VMEM-resident, bf16 MXU operands, bf16 outputs)
# -----------------------------------------------------------------------------

def _proj_split_kernel(x_ref, w_ref, b_ref, *out_refs, d):
    x = x_ref[...].astype(jnp.bfloat16)
    w = w_ref[...].astype(jnp.bfloat16)
    r = jnp.dot(x, w, preferred_element_type=jnp.float32) + b_ref[...]
    for idx, oref in enumerate(out_refs):
        oref[...] = r[:, idx * d:(idx + 1) * d].astype(oref.dtype)


def fused_proj_split(x, w, b, n_out, *, tm=None):
    """x @ w + b, output split along the last dim into n_out bf16 arrays."""
    M, K = x.shape
    N = w.shape[1]
    d = N // n_out
    tm = tm or _default_row_tile()
    tile, Mp = _row_plan(M, tm)
    xp = _pad_axis0(x, Mp)
    outs = pl.pallas_call(
        functools.partial(_proj_split_kernel, d=d),
        out_shape=tuple(jax.ShapeDtypeStruct((Mp, d), jnp.bfloat16)
                        for _ in range(n_out)),
        grid=(Mp // tile,),
        in_specs=[
            pl.BlockSpec((tile, K), lambda i: (i, 0)),
            pl.BlockSpec((K, N), lambda i: (0, 0)),
            pl.BlockSpec((1, N), lambda i: (0, 0)),
        ],
        out_specs=tuple(pl.BlockSpec((tile, d), lambda i: (i, 0))
                        for _ in range(n_out)),
        compiler_params=pltpu.CompilerParams(
            dimension_semantics=("parallel",), vmem_limit_bytes=_VMEM_LIMIT),
    )(xp, w, b.reshape(1, N))
    if Mp != M:
        outs = tuple(o[:M] for o in outs)
    return outs


def linear_rows(x, w, b, **kw):
    return fused_proj_split(x, w, b, 1, **kw)[0]


# -----------------------------------------------------------------------------
# Fused attention block: per-head softmax(QK^T)V + out-proj + residual + LN
# Grid (B, Lq//tq), both "parallel" (megacore); K/V whole per batch in VMEM.
# -----------------------------------------------------------------------------

def _attn_fused_kernel(*refs, nhead, dh, tq, causal, has_mask):
    if has_mask:
        (q_ref, k_ref, v_ref, r_ref, wo_ref, bo_ref, g_ref, be_ref,
         m_ref, o_ref, ctx_sc) = refs
    else:
        (q_ref, k_ref, v_ref, r_ref, wo_ref, bo_ref, g_ref, be_ref,
         o_ref, ctx_sc) = refs
        m_ref = None

    q = q_ref[0]            # (tq, D) bf16 (1/sqrt(dh) already folded into Wq)
    k = k_ref[0]            # (Lk, D) bf16
    v = v_ref[0]            # (Lk, D) bf16
    Lk = k.shape[0]

    add = m_ref[...] if m_ref is not None else None
    if causal:
        # In-kernel causal mask: no (Lq, Lk) f32 mask DMA.
        q0 = pl.program_id(1) * tq
        rows = q0 + jax.lax.broadcasted_iota(jnp.int32, (tq, Lk), 0)
        cols = jax.lax.broadcasted_iota(jnp.int32, (tq, Lk), 1)
        cmask = jnp.where(rows >= cols, 0.0, -1e30).astype(jnp.float32)
        add = cmask if add is None else add + cmask

    # Per-head attention; each head's context written straight into its slice of
    # the VMEM scratch (no concatenate, short live ranges).
    for h in range(nhead):
        lo = h * dh
        qh = q[:, lo:lo + dh]
        kh = k[:, lo:lo + dh]
        vh = v[:, lo:lo + dh]
        s = jax.lax.dot_general(qh, kh, (((1,), (1,)), ((), ())),
                                preferred_element_type=jnp.float32)
        if add is not None:
            s = s + add
        s = s - jnp.max(s, axis=-1, keepdims=True)
        p = jnp.exp(s)
        inv = pl.reciprocal(jnp.sum(p, axis=-1, keepdims=True), approx=True)
        p = p * inv
        ctx_sc[:, lo:lo + dh] = jnp.dot(p.astype(jnp.bfloat16), vh,
                                        preferred_element_type=jnp.float32)

    # Fused epilogue: out-projection + residual add + LayerNorm (f32 math).
    ctx = ctx_sc[...].astype(jnp.bfloat16)
    y = jnp.dot(ctx, wo_ref[...].astype(jnp.bfloat16),
                preferred_element_type=jnp.float32)
    y = y + bo_ref[...] + r_ref[0].astype(jnp.float32)
    mu = jnp.mean(y, axis=-1, keepdims=True)
    var = jnp.mean((y - mu) ** 2, axis=-1, keepdims=True)
    o_ref[0] = ((y - mu) * jax.lax.rsqrt(var + 1e-5) * g_ref[...]
                + be_ref[...]).astype(o_ref.dtype)


def _attn_q_tile(Lq, target):
    if Lq <= target:
        return Lq
    if Lq % target == 0:
        return target
    t = (target // 8) * 8
    while t >= 8:
        if Lq % t == 0:
            return t
        t -= 8
    return Lq


def attention_block(q, k, v, residual, wo, bo, gamma, beta, *, nhead,
                    mask=None, causal=False, tq_target=256):
    # q/residual: (B, Lq, D) bf16; k/v: (B, Lk, D) bf16; mask: additive (Lq, Lk) or None.
    # TODO(synk): add an Lk ("arbitrary") online-softmax grid axis for very long
    # memory lengths; K/V are currently kept whole per batch in VMEM.
    B, Lq, D = q.shape
    Lk = k.shape[1]
    dh = D // nhead
    tq = _attn_q_tile(Lq, tq_target)
    nq = Lq // tq

    in_specs = [
        pl.BlockSpec((1, tq, D), lambda b, qi: (b, qi, 0)),   # Q tile
        pl.BlockSpec((1, Lk, D), lambda b, qi: (b, 0, 0)),    # K (whole, reused)
        pl.BlockSpec((1, Lk, D), lambda b, qi: (b, 0, 0)),    # V (whole, reused)
        pl.BlockSpec((1, tq, D), lambda b, qi: (b, qi, 0)),   # residual tile
        pl.BlockSpec((D, D), lambda b, qi: (0, 0)),           # Wo
        pl.BlockSpec((1, D), lambda b, qi: (0, 0)),           # bo
        pl.BlockSpec((1, D), lambda b, qi: (0, 0)),           # gamma
        pl.BlockSpec((1, D), lambda b, qi: (0, 0)),           # beta
    ]
    args = [q, k, v, residual, wo, bo.reshape(1, D),
            gamma.reshape(1, D), beta.reshape(1, D)]
    has_mask = mask is not None
    if has_mask:
        in_specs.append(pl.BlockSpec((tq, Lk), lambda b, qi: (qi, 0)))
        args.append(mask.astype(jnp.float32))

    kern = functools.partial(_attn_fused_kernel, nhead=nhead, dh=dh, tq=tq,
                             causal=causal, has_mask=has_mask)
    return pl.pallas_call(
        kern,
        out_shape=jax.ShapeDtypeStruct((B, Lq, D), jnp.bfloat16),
        grid=(B, nq),
        in_specs=in_specs,
        out_specs=pl.BlockSpec((1, tq, D), lambda b, qi: (b, qi, 0)),
        scratch_shapes=[pltpu.VMEM((tq, D), jnp.float32)],
        compiler_params=pltpu.CompilerParams(
            dimension_semantics=("parallel", "parallel"),
            vmem_limit_bytes=_VMEM_LIMIT),
    )(*args)


# -----------------------------------------------------------------------------
# FFN(+ReLU) + residual add + LayerNorm, fused
# -----------------------------------------------------------------------------

def _ffn_add_ln_kernel(x_ref, w1_ref, b1_ref, w2_ref, b2_ref, g_ref, be_ref, o_ref):
    x = x_ref[...]
    h = jnp.dot(x.astype(jnp.bfloat16), w1_ref[...].astype(jnp.bfloat16),
                preferred_element_type=jnp.float32) + b1_ref[...]
    h = jnp.maximum(h, 0.0)
    y = jnp.dot(h.astype(jnp.bfloat16), w2_ref[...].astype(jnp.bfloat16),
                preferred_element_type=jnp.float32) + b2_ref[...]
    y = y + x.astype(jnp.float32)
    mu = jnp.mean(y, axis=-1, keepdims=True)
    var = jnp.mean((y - mu) ** 2, axis=-1, keepdims=True)
    o_ref[...] = ((y - mu) * jax.lax.rsqrt(var + 1e-5) * g_ref[...]
                  + be_ref[...]).astype(o_ref.dtype)


def ffn_add_ln(x, w1, b1, w2, b2, gamma, beta, *, tm=None):
    M, D = x.shape
    F = w1.shape[1]
    tm = tm or _default_row_tile()
    tile, Mp = _row_plan(M, tm)
    xp = _pad_axis0(x, Mp)
    out = pl.pallas_call(
        _ffn_add_ln_kernel,
        out_shape=jax.ShapeDtypeStruct((Mp, D), jnp.bfloat16),
        grid=(Mp // tile,),
        in_specs=[
            pl.BlockSpec((tile, D), lambda i: (i, 0)),
            pl.BlockSpec((D, F), lambda i: (0, 0)),
            pl.BlockSpec((1, F), lambda i: (0, 0)),
            pl.BlockSpec((F, D), lambda i: (0, 0)),
            pl.BlockSpec((1, D), lambda i: (0, 0)),
            pl.BlockSpec((1, D), lambda i: (0, 0)),
            pl.BlockSpec((1, D), lambda i: (0, 0)),
        ],
        out_specs=pl.BlockSpec((tile, D), lambda i: (i, 0)),
        compiler_params=pltpu.CompilerParams(
            dimension_semantics=("parallel",), vmem_limit_bytes=_VMEM_LIMIT),
    )(xp, w1, b1.reshape(1, F), w2, b2.reshape(1, D),
      gamma.reshape(1, D), beta.reshape(1, D))
    return out[:M] if Mp != M else out


# -----------------------------------------------------------------------------
# fc_out: tied-weight vocab projection (contracts against stored (V, D) layout)
# -----------------------------------------------------------------------------

def _fcout_kernel(x_ref, w_ref, b_ref, o_ref):
    x = x_ref[...].astype(jnp.bfloat16)          # (tm, D)
    w = w_ref[...].astype(jnp.bfloat16)          # (tn, D), stored layout
    acc = jax.lax.dot_general(x, w, (((1,), (1,)), ((), ())),
                              preferred_element_type=jnp.float32)
    o_ref[...] = (acc + b_ref[...]).astype(o_ref.dtype)


def fc_out(x, emb, bias, *, tm=None, tn=2048, out_dtype=jnp.bfloat16):
    M, D = x.shape
    V = emb.shape[0]
    tm = tm or _default_row_tile()
    tile_m, Mp = _row_plan(M, tm)
    tile_n, Vp = _row_plan(V, tn)
    xp = _pad_axis0(x, Mp)
    emb_p = _pad_axis0(emb.astype(jnp.bfloat16), Vp)
    bias_p = bias if Vp == V else jnp.pad(bias, (0, Vp - V))
    out = pl.pallas_call(
        _fcout_kernel,
        out_shape=jax.ShapeDtypeStruct((Mp, Vp), out_dtype),
        # Vocab tiles on the OUTER axis so the (tn, D) weight tile is reused
        # across the inner row-tile loop (fetched once per vocab tile).
        grid=(Vp // tile_n, Mp // tile_m),
        in_specs=[
            pl.BlockSpec((tile_m, D), lambda j, i: (i, 0)),
            pl.BlockSpec((tile_n, D), lambda j, i: (j, 0)),
            pl.BlockSpec((1, tile_n), lambda j, i: (0, j)),
        ],
        out_specs=pl.BlockSpec((tile_m, tile_n), lambda j, i: (i, j)),
        compiler_params=pltpu.CompilerParams(
            dimension_semantics=("parallel", "parallel"),
            vmem_limit_bytes=_VMEM_LIMIT),
    )(xp, emb_p, bias_p.reshape(1, Vp))
    if Mp != M or Vp != V:
        out = out[:M, :V]
    return out


# -----------------------------------------------------------------------------
# Model glue (embedding lookup / mask prep / parameter plumbing) in plain JAX
# -----------------------------------------------------------------------------

def _to_additive_mask(mask):
    if mask is None:
        return None
    if mask.dtype == jnp.bool_:
        # PyTorch-style boolean mask: True = masked -> large negative additive mask.
        return jnp.where(mask, jnp.float32(-1e30), jnp.float32(0.0))
    return mask.astype(jnp.float32)


def decoder_layer(x, memory, p, nhead, tgt_mask, memory_mask, tgt_is_causal):
    # Post-norm nn.TransformerDecoderLayer (norm_first=False), relu activation,
    # dropout = identity (eval mode).
    B, L, D = x.shape
    S = memory.shape[1]
    x2 = x.reshape(B * L, D)
    m2 = memory.reshape(B * S, D)

    # --- self attention: QKV proj, then fused attn + out-proj + residual + LN ---
    q, k, v = fused_proj_split(x2, p["sa_w_qkv"], p["sa_b_qkv"], 3)
    x = attention_block(q.reshape(B, L, D), k.reshape(B, L, D),
                        v.reshape(B, L, D), x,
                        p["sa_wo"], p["sa_bo"], p["ln1_g"], p["ln1_b"],
                        nhead=nhead, mask=tgt_mask, causal=tgt_is_causal)
    x2 = x.reshape(B * L, D)

    # --- cross attention ---
    q = linear_rows(x2, p["ca_wq"], p["ca_bq"])
    k, v = fused_proj_split(m2, p["ca_w_kv"], p["ca_b_kv"], 2)
    x = attention_block(q.reshape(B, L, D), k.reshape(B, S, D),
                        v.reshape(B, S, D), x,
                        p["ca_wo"], p["ca_bo"], p["ln2_g"], p["ln2_b"],
                        nhead=nhead, mask=memory_mask, causal=False)
    x2 = x.reshape(B * L, D)

    # --- feed forward + residual + LN ---
    x2 = ffn_add_ln(x2, p["w1"], p["b1"], p["w2"], p["b2"],
                    p["ln3_g"], p["ln3_b"])
    return x2.reshape(B, L, D)


def make_pos_encoding(max_len, d_model):
    position = jnp.arange(max_len, dtype=jnp.float32)[:, None]
    div_term = jnp.exp(
        jnp.arange(0, d_model, 2, dtype=jnp.float32) * (-math.log(10000.0) / d_model))
    pe = jnp.zeros((max_len, d_model), jnp.float32)
    pe = pe.at[:, 0::2].set(jnp.sin(position * div_term))
    pe = pe.at[:, 1::2].set(jnp.cos(position * div_term))
    return pe


def transformer_decoder(captions, encoder_outputs, params, *, d_model, nhead,
                        tgt_mask=None, memory_mask=None, tgt_is_causal=False):
    B, L = captions.shape
    V, D = params["emb"].shape

    # TODO(synk): embedding-table gather has no clean tiled Pallas equivalent at
    # this size; the lookup + scale + pos-enc add are cheap elementwise XLA glue.
    x = jnp.take(params["emb"], captions, axis=0) * math.sqrt(d_model)   # (B, L, D)
    x = x + params["pe"][:L][None, :, :]
    x = x.astype(jnp.bfloat16)
    memory = encoder_outputs.astype(jnp.bfloat16)

    tgt_add = _to_additive_mask(tgt_mask)
    mem_add = _to_additive_mask(memory_mask)

    for lp in params["layers"]:
        x = decoder_layer(x, memory, lp, nhead, tgt_add, mem_add, tgt_is_causal)

    # fc_out with tied weights: logits = x @ emb^T + b.
    logits = fc_out(x.reshape(B * L, D), params["emb"], params["fc_out_b"])
    return logits.reshape(B, L, V)


# -----------------------------------------------------------------------------
# Deterministic parameter init (shapes follow the PyTorch module __init__).
# MXU weights stored in bf16 (f32 accumulation in-kernel); biases/LN/emb in f32.
# The 1/sqrt(Dh) attention scale is folded into the query projections.
# -----------------------------------------------------------------------------

def _randn(key, shape, scale=0.02):
    return scale * jax.random.normal(key, shape, jnp.float32)


def init_params(key, vocab_size, d_model, nhead, dim_feedforward, num_layers,
                max_len=256):
    dh = d_model // nhead
    qscale = 1.0 / math.sqrt(dh)
    keys = jax.random.split(key, num_layers + 1)
    emb = _randn(keys[0], (vocab_size, d_model))

    layers = []
    for li in range(num_layers):
        lk = jax.random.split(keys[li + 1], 10)
        wq = _randn(lk[0], (d_model, d_model))
        wk = _randn(lk[1], (d_model, d_model))
        wv = _randn(lk[2], (d_model, d_model))
        wo = _randn(lk[3], (d_model, d_model))
        cwq = _randn(lk[4], (d_model, d_model))
        cwk = _randn(lk[5], (d_model, d_model))
        cwv = _randn(lk[6], (d_model, d_model))
        cwo = _randn(lk[7], (d_model, d_model))
        layers.append({
            "sa_w_qkv": jnp.concatenate([wq * qscale, wk, wv], axis=1).astype(jnp.bfloat16),
            "sa_b_qkv": jnp.zeros((3 * d_model,), jnp.float32),
            "sa_wo": wo.astype(jnp.bfloat16),
            "sa_bo": jnp.zeros((d_model,), jnp.float32),
            "ca_wq": (cwq * qscale).astype(jnp.bfloat16),
            "ca_bq": jnp.zeros((d_model,), jnp.float32),
            "ca_w_kv": jnp.concatenate([cwk, cwv], axis=1).astype(jnp.bfloat16),
            "ca_b_kv": jnp.zeros((2 * d_model,), jnp.float32),
            "ca_wo": cwo.astype(jnp.bfloat16),
            "ca_bo": jnp.zeros((d_model,), jnp.float32),
            "w1": _randn(lk[8], (d_model, dim_feedforward)).astype(jnp.bfloat16),
            "b1": jnp.zeros((dim_feedforward,), jnp.float32),
            "w2": _randn(lk[9], (dim_feedforward, d_model)).astype(jnp.bfloat16),
            "b2": jnp.zeros((d_model,), jnp.float32),
            "ln1_g": jnp.ones((d_model,), jnp.float32), "ln1_b": jnp.zeros((d_model,), jnp.float32),
            "ln2_g": jnp.ones((d_model,), jnp.float32), "ln2_b": jnp.zeros((d_model,), jnp.float32),
            "ln3_g": jnp.ones((d_model,), jnp.float32), "ln3_b": jnp.zeros((d_model,), jnp.float32),
        })

    return {
        "emb": emb,                                     # tied with fc_out.weight
        "fc_out_b": jnp.zeros((vocab_size,), jnp.float32),
        "pe": make_pos_encoding(max_len, d_model),
        "layers": layers,
    }


# -----------------------------------------------------------------------------
# Demo
# -----------------------------------------------------------------------------

if __name__ == "__main__":
    vocab_size = 50
    d_model = 32
    nhead = 4
    dim_feedforward = 64
    num_layers = 2
    B, L, S = 2, 8, 10   # batch, target (caption) length, memory (encoder) length

    key = jax.random.PRNGKey(0)
    k_params, k_cap, k_mem = jax.random.split(key, 3)

    params = init_params(k_params, vocab_size, d_model, nhead, dim_feedforward,
                         num_layers)
    captions = jax.random.randint(k_cap, (B, L), 0, vocab_size, dtype=jnp.int32)
    encoder_outputs = jax.random.normal(k_mem, (B, S, d_model), jnp.float32)

    @jax.jit
    def fwd(cap, enc, prm):
        # Causal target mask is generated inside the attention kernel
        # (tgt_is_causal=True), matching nn.Transformer causal-mask semantics.
        return transformer_decoder(cap, enc, prm, d_model=d_model, nhead=nhead,
                                   tgt_is_causal=True, memory_mask=None)

    logits = fwd(captions, encoder_outputs, params)
    jax.block_until_ready(logits)

    assert logits.shape == (B, L, vocab_size)
    assert bool(jnp.all(jnp.isfinite(logits.astype(jnp.float32))))
    print("KERNEL_OK")
</pallas_src>

<mosaic_0001>
module attributes {stable_mosaic.version = 11 : i64} {
  func.func @_proj_split_kernel(%arg0: i32, %arg1: memref<16x32xbf16, #tpu.memory_space<vmem>>, %arg2: memref<32x96xbf16, #tpu.memory_space<vmem>>, %arg3: memref<1x96xf32, #tpu.memory_space<vmem>>, %arg4: memref<16x32xbf16, #tpu.memory_space<vmem>>, %arg5: memref<16x32xbf16, #tpu.memory_space<vmem>>, %arg6: memref<16x32xbf16, #tpu.memory_space<vmem>>) attributes {dimension_semantics = [#tpu.dimension_semantics<parallel>], iteration_bounds = array<i64: 1>, scalar_prefetch = 0 : i64, scratch_operands = 0 : i64, tpu.core_type = #tpu.core_type<tc>, window_params = [{transform_indices = @transform_0, window_bounds = array<i64: 16, 32>}, {pipeline_mode = #tpu.pipeline_mode<synchronous>, transform_indices = @transform_1, window_bounds = array<i64: 32, 96>}, {pipeline_mode = #tpu.pipeline_mode<synchronous>, transform_indices = @transform_2, window_bounds = array<i64: 1, 96>}, {transform_indices = @transform_3, window_bounds = array<i64: 16, 32>}, {transform_indices = @transform_4, window_bounds = array<i64: 16, 32>}, {transform_indices = @transform_5, window_bounds = array<i64: 16, 32>}]} {
    %c0 = arith.constant 0 : index
    %c0_0 = arith.constant 0 : index
    %0 = vector.load %arg1[%c0, %c0_0] : memref<16x32xbf16, #tpu.memory_space<vmem>>, vector<16x32xbf16>
    %c0_1 = arith.constant 0 : index
    %c0_2 = arith.constant 0 : index
    %1 = vector.load %arg2[%c0_1, %c0_2] : memref<32x96xbf16, #tpu.memory_space<vmem>>, vector<32x96xbf16>
    %cst = arith.constant dense<0.000000e+00> : vector<16x96xf32>
    %2 = tpu.matmul %0, %1, %cst {dimension_numbers = #tpu.dot_dimension_numbers<[1], [0], [0], [1], [0, 0, 1, 1], [], []>} : vector<16x32xbf16>, vector<32x96xbf16>, vector<16x96xf32> -> vector<16x96xf32>
    %c0_3 = arith.constant 0 : index
    %c0_4 = arith.constant 0 : index
    %3 = vector.load %arg3[%c0_3, %c0_4] : memref<1x96xf32, #tpu.memory_space<vmem>>, vector<1x96xf32>
    %4 = vector.broadcast %3 : vector<1x96xf32> to vector<16x96xf32>
    %5 = arith.addf %2, %4 : vector<16x96xf32>
    %6 = vector.extract_strided_slice %5 {offsets = [0, 0], sizes = [16, 32], strides = [1, 1]} : vector<16x96xf32> to vector<16x32xf32>
    %7 = arith.truncf %6 : vector<16x32xf32> to vector<16x32xbf16>
    %c0_5 = arith.constant 0 : index
    %c0_6 = arith.constant 0 : index
    %8 = vector.load %arg4[%c0_5, %c0_6] : memref<16x32xbf16, #tpu.memory_space<vmem>>, vector<16x32xbf16>
    tpu.vector_store %arg4[%c0_5, %c0_6], %7 {strides = array<i32>} : memref<16x32xbf16, #tpu.memory_space<vmem>>, vector<16x32xbf16>,
    %9 = vector.extract_strided_slice %5 {offsets = [0, 32], sizes = [16, 32], strides = [1, 1]} : vector<16x96xf32> to vector<16x32xf32>
    %10 = arith.truncf %9 : vector<16x32xf32> to vector<16x32xbf16>
    %c0_7 = arith.constant 0 : index
    %c0_8 = arith.constant 0 : index
    %11 = vector.load %arg5[%c0_7, %c0_8] : memref<16x32xbf16, #tpu.memory_space<vmem>>, vector<16x32xbf16>
    tpu.vector_store %arg5[%c0_7, %c0_8], %10 {strides = array<i32>} : memref<16x32xbf16, #tpu.memory_space<vmem>>, vector<16x32xbf16>,
    %12 = vector.extract_strided_slice %5 {offsets = [0, 64], sizes = [16, 32], strides = [1, 1]} : vector<16x96xf32> to vector<16x32xf32>
    %13 = arith.truncf %12 : vector<16x32xf32> to vector<16x32xbf16>
    %c0_9 = arith.constant 0 : index
    %c0_10 = arith.constant 0 : index
    %14 = vector.load %arg6[%c0_9, %c0_10] : memref<16x32xbf16, #tpu.memory_space<vmem>>, vector<16x32xbf16>
    tpu.vector_store %arg6[%c0_9, %c0_10], %13 {strides = array<i32>} : memref<16x32xbf16, #tpu.memory_space<vmem>>, vector<16x32xbf16>,
    return
  }
  func.func @transform_0(%arg0: i32) -> (i32, i32) {
    %c0_i32 = arith.constant 0 : i32
    %c0_i32_0 = arith.constant 0 : i32
    return %arg0, %c0_i32 : i32, i32
  }
  func.func @transform_1(%arg0: i32) -> (i32, i32) {
    %c0_i32 = arith.constant 0 : i32
    %c0_i32_0 = arith.constant 0 : i32
    %c0_i32_1 = arith.constant 0 : i32
    return %c0_i32, %c0_i32_0 : i32, i32
  }
  func.func @transform_2(%arg0: i32) -> (i32, i32) {
    %c0_i32 = arith.constant 0 : i32
    %c0_i32_0 = arith.constant 0 : i32
    %c0_i32_1 = arith.constant 0 : i32
    return %c0_i32, %c0_i32_0 : i32, i32
  }
  func.func @transform_3(%arg0: i32) -> (i32, i32) {
    %c0_i32 = arith.constant 0 : i32
    %c0_i32_0 = arith.constant 0 : i32
    return %arg0, %c0_i32 : i32, i32
  }
  func.func @transform_4(%arg0: i32) -> (i32, i32) {
    %c0_i32 = arith.constant 0 : i32
    %c0_i32_0 = arith.constant 0 : i32
    return %arg0, %c0_i32 : i32, i32
  }
  func.func @transform_5(%arg0: i32) -> (i32, i32) {
    %c0_i32 = arith.constant 0 : i32
    %c0_i32_0 = arith.constant 0 : i32
    return %arg0, %c0_i32 : i32, i32
  }
}

module attributes {stable_mosaic.version = 11 : i64} {
  func.func @_proj_split_kernel(%arg0: i32, %arg1: memref<16x32xbf16, #tpu.memory_space<vmem>>, %arg2: memref<32x32xbf16, #tpu.memory_space<vmem>>, %arg3: memref<1x32xf32, #tpu.memory_space<vmem>>, %arg4: memref<16x32xbf16, #tpu.memory_space<vmem>>) attributes {dimension_semantics = [#tpu.dimension_semantics<parallel>], iteration_bounds = array<i64: 1>, scalar_prefetch = 0 : i64, scratch_operands = 0 : i64, tpu.core_type = #tpu.core_type<tc>, window_params = [{transform_indices = @transform_0, window_bounds = array<i64: 16, 32>}, {pipeline_mode = #tpu.pipeline_mode<synchronous>, transform_indices = @transform_1, window_bounds = array<i64: 32, 32>}, {pipeline_mode = #tpu.pipeline_mode<synchronous>, transform_indices = @transform_2, window_bounds = array<i64: 1, 32>}, {transform_indices = @transform_3, window_bounds = array<i64: 16, 32>}]} {
    %c0 = arith.constant 0 : index
    %c0_0 = arith.constant 0 : index
    %0 = vector.load %arg1[%c0, %c0_0] : memref<16x32xbf16, #tpu.memory_space<vmem>>, vector<16x32xbf16>
    %c0_1 = arith.constant 0 : index
    %c0_2 = arith.constant 0 : index
    %1 = vector.load %arg2[%c0_1, %c0_2] : memref<32x32xbf16, #tpu.memory_space<vmem>>, vector<32x32xbf16>
    %cst = arith.constant dense<0.000000e+00> : vector<16x32xf32>
    %2 = tpu.matmul %0, %1, %cst {dimension_numbers = #tpu.dot_dimension_numbers<[1], [0], [0], [1], [0, 0, 1, 1], [], []>} : vector<16x32xbf16>, vector<32x32xbf16>, vector<16x32xf32> -> vector<16x32xf32>
    %c0_3 = arith.constant 0 : index
    %c0_4 = arith.constant 0 : index
    %3 = vector.load %arg3[%c0_3, %c0_4] : memref<1x32xf32, #tpu.memory_space<vmem>>, vector<1x32xf32>
    %4 = vector.broadcast %3 : vector<1x32xf32> to vector<16x32xf32>
    %5 = arith.addf %2, %4 : vector<16x32xf32>
    %6 = arith.truncf %5 : vector<16x32xf32> to vector<16x32xbf16>
    %c0_5 = arith.constant 0 : index
    %c0_6 = arith.constant 0 : index
    %7 = vector.load %arg4[%c0_5, %c0_6] : memref<16x32xbf16, #tpu.memory_space<vmem>>, vector<16x32xbf16>
    tpu.vector_store %arg4[%c0_5, %c0_6], %6 {strides = array<i32>} : memref<16x32xbf16, #tpu.memory_space<vmem>>, vector<16x32xbf16>,
    return
  }
  func.func @transform_0(%arg0: i32) -> (i32, i32) {
    %c0_i32 = arith.constant 0 : i32
    %c0_i32_0 = arith.constant 0 : i32
    return %arg0, %c0_i32 : i32, i32
  }
  func.func @transform_1(%arg0: i32) -> (i32, i32) {
    %c0_i32 = arith.constant 0 : i32
    %c0_i32_0 = arith.constant 0 : i32
    %c0_i32_1 = arith.constant 0 : i32
    return %c0_i32, %c0_i32_0 : i32, i32
  }
  func.func @transform_2(%arg0: i32) -> (i32, i32) {
    %c0_i32 = arith.constant 0 : i32
    %c0_i32_0 = arith.constant 0 : i32
    %c0_i32_1 = arith.constant 0 : i32
    return %c0_i32, %c0_i32_0 : i32, i32
  }
  func.func @transform_3(%arg0: i32) -> (i32, i32) {
    %c0_i32 = arith.constant 0 : i32
    %c0_i32_0 = arith.constant 0 : i32
    return %arg0, %c0_i32 : i32, i32
  }
}

module attributes {stable_mosaic.version = 11 : i64} {
  func.func @_attn_fused_kernel(%arg0: i32, %arg1: i32, %arg2: memref<1x8x32xbf16, #tpu.memory_space<vmem>>, %arg3: memref<1x8x32xbf16, #tpu.memory_space<vmem>>, %arg4: memref<1x8x32xbf16, #tpu.memory_space<vmem>>, %arg5: memref<1x8x32xbf16, #tpu.memory_space<vmem>>, %arg6: memref<32x32xbf16, #tpu.memory_space<vmem>>, %arg7: memref<1x32xf32, #tpu.memory_space<vmem>>, %arg8: memref<1x32xf32, #tpu.memory_space<vmem>>, %arg9: memref<1x32xf32, #tpu.memory_space<vmem>>, %arg10: memref<1x8x32xbf16, #tpu.memory_space<vmem>>, %arg11: memref<8x32xf32, #tpu.memory_space<vmem>>) attributes {dimension_semantics = [#tpu.dimension_semantics<parallel>, #tpu.dimension_semantics<parallel>], iteration_bounds = array<i64: 2, 1>, scalar_prefetch = 0 : i64, scratch_operands = 1 : i64, tpu.core_type = #tpu.core_type<tc>, window_params = [{transform_indices = @transform_0, window_bounds = array<i64: 1, 8, 32>}, {transform_indices = @transform_1, window_bounds = array<i64: 1, 8, 32>}, {transform_indices = @transform_2, window_bounds = array<i64: 1, 8, 32>}, {transform_indices = @transform_3, window_bounds = array<i64: 1, 8, 32>}, {pipeline_mode = #tpu.pipeline_mode<synchronous>, transform_indices = @transform_4, window_bounds = array<i64: 32, 32>}, {pipeline_mode = #tpu.pipeline_mode<synchronous>, transform_indices = @transform_5, window_bounds = array<i64: 1, 32>}, {pipeline_mode = #tpu.pipeline_mode<synchronous>, transform_indices = @transform_6, window_bounds = array<i64: 1, 32>}, {pipeline_mode = #tpu.pipeline_mode<synchronous>, transform_indices = @transform_7, window_bounds = array<i64: 1, 32>}, {transform_indices = @transform_8, window_bounds = array<i64: 1, 8, 32>}]} {
    %c0 = arith.constant 0 : index
    %c0_0 = arith.constant 0 : index
    %c0_1 = arith.constant 0 : index
    %0 = vector.load %arg2[%c0, %c0_0, %c0_1] : memref<1x8x32xbf16, #tpu.memory_space<vmem>>, vector<1x8x32xbf16>
    %1 = vector.shape_cast %0 : vector<1x8x32xbf16> to vector<8x32xbf16>
    %c0_2 = arith.constant 0 : index
    %c0_3 = arith.constant 0 : index
    %c0_4 = arith.constant 0 : index
    %2 = vector.load %arg3[%c0_2, %c0_3, %c0_4] : memref<1x8x32xbf16, #tpu.memory_space<vmem>>, vector<1x8x32xbf16>
    %3 = vector.shape_cast %2 : vector<1x8x32xbf16> to vector<8x32xbf16>
    %c0_5 = arith.constant 0 : index
    %c0_6 = arith.constant 0 : index
    %c0_7 = arith.constant 0 : index
    %4 = vector.load %arg4[%c0_5, %c0_6, %c0_7] : memref<1x8x32xbf16, #tpu.memory_space<vmem>>, vector<1x8x32xbf16>
    %5 = vector.shape_cast %4 : vector<1x8x32xbf16> to vector<8x32xbf16>
    %c8_i32 = arith.constant 8 : i32
    %6 = arith.muli %arg1, %c8_i32 : i32
    %7 = tpu.iota {dimensions = array<i32: 0>} : vector<8x8xi32>
    %8 = vector.broadcast %6 : i32 to vector<8x8xi32>
    %9 = arith.addi %8, %7 : vector<8x8xi32>
    %10 = tpu.iota {dimensions = array<i32: 1>} : vector<8x8xi32>
    %11 = arith.cmpi sge, %9, %10 : vector<8x8xi32>
    %cst = arith.constant 0.000000e+00 : f32
    %cst_8 = arith.constant -1.000000e+30 : f32
    %12 = vector.broadcast %cst : f32 to vector<8x8xf32>
    %13 = vector.broadcast %cst_8 : f32 to vector<8x8xf32>
    %14 = arith.select %11, %12, %13 : vector<8x8xi1>, vector<8x8xf32>
    %15 = vector.extract_strided_slice %1 {offsets = [0, 0], sizes = [8, 8], strides = [1, 1]} : vector<8x32xbf16> to vector<8x8xbf16>
    %16 = vector.extract_strided_slice %3 {offsets = [0, 0], sizes = [8, 8], strides = [1, 1]} : vector<8x32xbf16> to vector<8x8xbf16>
    %17 = vector.extract_strided_slice %5 {offsets = [0, 0], sizes = [8, 8], strides = [1, 1]} : vector<8x32xbf16> to vector<8x8xbf16>
    %cst_9 = arith.constant dense<0.000000e+00> : vector<8x8xf32>
    %18 = tpu.matmul %15, %16, %cst_9 {dimension_numbers = #tpu.dot_dimension_numbers<[1], [1], [0], [0], [0, 0, 1, 0], [], []>} : vector<8x8xbf16>, vector<8x8xbf16>, vector<8x8xf32> -> vector<8x8xf32>
    %19 = arith.addf %18, %14 : vector<8x8xf32>
    %cst_10 = arith.constant dense<0xFF800000> : vector<8xf32>
    %20 = vector.multi_reduction <maximumf>, %19, %cst_10 [1] : vector<8x8xf32> to vector<8xf32>
    %21 = vector.shape_cast %20 : vector<8xf32> to vector<8x1xf32>
    %22 = vector.broadcast %21 : vector<8x1xf32> to vector<8x8xf32>
    %23 = arith.subf %19, %22 : vector<8x8xf32>
    %24 = math.exp %23 : vector<8x8xf32>
    %cst_11 = arith.constant dense<0.000000e+00> : vector<8xf32>
    %25 = vector.multi_reduction <add>, %24, %cst_11 [1] : vector<8x8xf32> to vector<8xf32>
    %26 = vector.shape_cast %25 : vector<8xf32> to vector<8x1xf32>
    %27 = tpu.reciprocal %26 {approx = true} : vector<8x1xf32> -> vector<8x1xf32>
    %28 = vector.broadcast %27 : vector<8x1xf32> to vector<8x8xf32>
    %29 = arith.mulf %24, %28 : vector<8x8xf32>
    %30 = arith.truncf %29 : vector<8x8xf32> to vector<8x8xbf16>
    %cst_12 = arith.constant dense<0.000000e+00> : vector<8x8xf32>
    %31 = tpu.matmul %30, %17, %cst_12 {dimension_numbers = #tpu.dot_dimension_numbers<[1], [0], [0], [1], [0, 0, 1, 1], [], []>} : vector<8x8xbf16>, vector<8x8xbf16>, vector<8x8xf32> -> vector<8x8xf32>
    %c0_13 = arith.constant 0 : index
    %c0_14 = arith.constant 0 : index
    %32 = vector.load %arg11[%c0_13, %c0_14] : memref<8x32xf32, #tpu.memory_space<vmem>>, vector<8x8xf32>
    tpu.vector_store %arg11[%c0_13, %c0_14], %31 {strides = array<i32>} : memref<8x32xf32, #tpu.memory_space<vmem>>, vector<8x8xf32>,
    %33 = vector.extract_strided_slice %1 {offsets = [0, 8], sizes = [8, 8], strides = [1, 1]} : vector<8x32xbf16> to vector<8x8xbf16>
    %34 = vector.extract_strided_slice %3 {offsets = [0, 8], sizes = [8, 8], strides = [1, 1]} : vector<8x32xbf16> to vector<8x8xbf16>
    %35 = vector.extract_strided_slice %5 {offsets = [0, 8], sizes = [8, 8], strides = [1, 1]} : vector<8x32xbf16> to vector<8x8xbf16>
    %cst_15 = arith.constant dense<0.000000e+00> : vector<8x8xf32>
    %36 = tpu.matmul %33, %34, %cst_15 {dimension_numbers = #tpu.dot_dimension_numbers<[1], [1], [0], [0], [0, 0, 1, 0], [], []>} : vector<8x8xbf16>, vector<8x8xbf16>, vector<8x8xf32> -> vector<8x8xf32>
    %37 = arith.addf %36, %14 : vector<8x8xf32>
    %cst_16 = arith.constant dense<0xFF800000> : vector<8xf32>
    %38 = vector.multi_reduction <maximumf>, %37, %cst_16 [1] : vector<8x8xf32> to vector<8xf32>
    %39 = vector.shape_cast %38 : vector<8xf32> to vector<8x1xf32>
    %40 = vector.broadcast %39 : vector<8x1xf32> to vector<8x8xf32>
    %41 = arith.subf %37, %40 : vector<8x8xf32>
    %42 = math.exp %41 : vector<8x8xf32>
    %cst_17 = arith.constant dense<0.000000e+00> : vector<8xf32>
    %43 = vector.multi_reduction <add>, %42, %cst_17 [1] : vector<8x8xf32> to vector<8xf32>
    %44 = vector.shape_cast %43 : vector<8xf32> to vector<8x1xf32>
    %45 = tpu.reciprocal %44 {approx = true} : vector<8x1xf32> -> vector<8x1xf32>
    %46 = vector.broadcast %45 : vector<8x1xf32> to vector<8x8xf32>
    %47 = arith.mulf %42, %46 : vector<8x8xf32>
    %48 = arith.truncf %47 : vector<8x8xf32> to vector<8x8xbf16>
    %cst_18 = arith.constant dense<0.000000e+00> : vector<8x8xf32>
    %49 = tpu.matmul %48, %35, %cst_18 {dimension_numbers = #tpu.dot_dimension_numbers<[1], [0], [0], [1], [0, 0, 1, 1], [], []>} : vector<8x8xbf16>, vector<8x8xbf16>, vector<8x8xf32> -> vector<8x8xf32>
    %c0_19 = arith.constant 0 : index
    %c8 = arith.constant 8 : index
    %50 = vector.load %arg11[%c0_19, %c8] : memref<8x32xf32, #tpu.memory_space<vmem>>, vector<8x8xf32>
    tpu.vector_store %arg11[%c0_19, %c8], %49 {strides = array<i32>} : memref<8x32xf32, #tpu.memory_space<vmem>>, vector<8x8xf32>,
    %51 = vector.extract_strided_slice %1 {offsets = [0, 16], sizes = [8, 8], strides = [1, 1]} : vector<8x32xbf16> to vector<8x8xbf16>
    %52 = vector.extract_strided_slice %3 {offsets = [0, 16], sizes = [8, 8], strides = [1, 1]} : vector<8x32xbf16> to vector<8x8xbf16>
    %53 = vector.extract_strided_slice %5 {offsets = [0, 16], sizes = [8, 8], strides = [1, 1]} : vector<8x32xbf16> to vector<8x8xbf16>
    %cst_20 = arith.constant dense<0.000000e+00> : vector<8x8xf32>
    %54 = tpu.matmul %51, %52, %cst_20 {dimension_numbers = #tpu.dot_dimension_numbers<[1], [1], [0], [0], [0, 0, 1, 0], [], []>} : vector<8x8xbf16>, vector<8x8xbf16>, vector<8x8xf32> -> vector<8x8xf32>
    %55 = arith.addf %54, %14 : vector<8x8xf32>
    %cst_21 = arith.constant dense<0xFF800000> : vector<8xf32>
    %56 = vector.multi_reduction <maximumf>, %55, %cst_21 [1] : vector<8x8xf32> to vector<8xf32>
    %57 = vector.shape_cast %56 : vector<8xf32> to vector<8x1xf32>
    %58 = vector.broadcast %57 : vector<8x1xf32> to vector<8x8xf32>
    %59 = arith.subf %55, %58 : vector<8x8xf32>
    %60 = math.exp %59 : vector<8x8xf32>
    %cst_22 = arith.constant dense<0.000000e+00> : vector<8xf32>
    %61 = vector.multi_reduction <add>, %60, %cst_22 [1] : vector<8x8xf32> to vector<8xf32>
    %62 = vector.shape_cast %61 : vector<8xf32> to vector<8x1xf32>
    %63 = tpu.reciprocal %62 {approx = true} : vector<8x1xf32> -> vector<8x1xf32>
    %64 = vector.broadcast %63 : vector<8x1xf32> to vector<8x8xf32>
    %65 = arith.mulf %60, %64 : vector<8x8xf32>
    %66 = arith.truncf %65 : vector<8x8xf32> to vector<8x8xbf16>
    %cst_23 = arith.constant dense<0.000000e+00> : vector<8x8xf32>
    %67 = tpu.matmul %66, %53, %cst_23 {dimension_numbers = #tpu.dot_dimension_numbers<[1], [0], [0], [1], [0, 0, 1, 1], [], []>} : vector<8x8xbf16>, vector<8x8xbf16>, vector<8x8xf32> -> vector<8x8xf32>
    %c0_24 = arith.constant 0 : index
    %c16 = arith.constant 16 : index
    %68 = vector.load %arg11[%c0_24, %c16] : memref<8x32xf32, #tpu.memory_space<vmem>>, vector<8x8xf32>
    tpu.vector_store %arg11[%c0_24, %c16], %67 {strides = array<i32>} : memref<8x32xf32, #tpu.memory_space<vmem>>, vector<8x8xf32>,
    %69 = vector.extract_strided_slice %1 {offsets = [0, 24], sizes = [8, 8], strides = [1, 1]} : vector<8x32xbf16> to vector<8x8xbf16>
    %70 = vector.extract_strided_slice %3 {offsets = [0, 24], sizes = [8, 8], strides = [1, 1]} : vector<8x32xbf16> to vector<8x8xbf16>
    %71 = vector.extract_strided_slice %5 {offsets = [0, 24], sizes = [8, 8], strides = [1, 1]} : vector<8x32xbf16> to vector<8x8xbf16>
    %cst_25 = arith.constant dense<0.000000e+00> : vector<8x8xf32>
    %72 = tpu.matmul %69, %70, %cst_25 {dimension_numbers = #tpu.dot_dimension_numbers<[1], [1], [0], [0], [0, 0, 1, 0], [], []>} : vector<8x8xbf16>, vector<8x8xbf16>, vector<8x8xf32> -> vector<8x8xf32>
    %73 = arith.addf %72, %14 : vector<8x8xf32>
    %cst_26 = arith.constant dense<0xFF800000> : vector<8xf32>
    %74 = vector.multi_reduction <maximumf>, %73, %cst_26 [1] : vector<8x8xf32> to vector<8xf32>
    %75 = vector.shape_cast %74 : vector<8xf32> to vector<8x1xf32>
    %76 = vector.broadcast %75 : vector<8x1xf32> to vector<8x8xf32>
    %77 = arith.subf %73, %76 : vector<8x8xf32>
    %78 = math.exp %77 : vector<8x8xf32>
    %cst_27 = arith.constant dense<0.000000e+00> : vector<8xf32>
    %79 = vector.multi_reduction <add>, %78, %cst_27 [1] : vector<8x8xf32> to vector<8xf32>
    %80 = vector.shape_cast %79 : vector<8xf32> to vector<8x1xf32>
    %81 = tpu.reciprocal %80 {approx = true} : vector<8x1xf32> -> vector<8x1xf32>
    %82 = vector.broadcast %81 : vector<8x1xf32> to vector<8x8xf32>
    %83 = arith.mulf %78, %82 : vector<8x8xf32>
    %84 = arith.truncf %83 : vector<8x8xf32> to vector<8x8xbf16>
    %cst_28 = arith.constant dense<0.000000e+00> : vector<8x8xf32>
    %85 = tpu.matmul %84, %71, %cst_28 {dimension_numbers = #tpu.dot_dimension_numbers<[1], [0], [0], [1], [0, 0, 1, 1], [], []>} : vector<8x8xbf16>, vector<8x8xbf16>, vector<8x8xf32> -> vector<8x8xf32>
    %c0_29 = arith.constant 0 : index
    %c24 = arith.constant 24 : index
    %86 = vector.load %arg11[%c0_29, %c24] : memref<8x32xf32, #tpu.memory_space<vmem>>, vector<8x8xf32>
    tpu.vector_store %arg11[%c0_29, %c24], %85 {strides = array<i32>} : memref<8x32xf32, #tpu.memory_space<vmem>>, vector<8x8xf32>,
    %c0_30 = arith.constant 0 : index
    %c0_31 = arith.constant 0 : index
    %87 = vector.load %arg11[%c0_30, %c0_31] : memref<8x32xf32, #tpu.memory_space<vmem>>, vector<8x32xf32>
    %88 = arith.truncf %87 : vector<8x32xf32> to vector<8x32xbf16>
    %c0_32 = arith.constant 0 : index
    %c0_33 = arith.constant 0 : index
    %89 = vector.load %arg6[%c0_32, %c0_33] : memref<32x32xbf16, #tpu.memory_space<vmem>>, vector<32x32xbf16>
    %cst_34 = arith.constant dense<0.000000e+00> : vector<8x32xf32>
    %90 = tpu.matmul %88, %89, %cst_34 {dimension_numbers = #tpu.dot_dimension_numbers<[1], [0], [0], [1], [0, 0, 1, 1], [], []>} : vector<8x32xbf16>, vector<32x32xbf16>, vector<8x32xf32> -> vector<8x32xf32>
    %c0_35 = arith.constant 0 : index
    %c0_36 = arith.constant 0 : index
    %91 = vector.load %arg7[%c0_35, %c0_36] : memref<1x32xf32, #tpu.memory_space<vmem>>, vector<1x32xf32>
    %92 = vector.broadcast %91 : vector<1x32xf32> to vector<8x32xf32>
    %93 = arith.addf %90, %92 : vector<8x32xf32>
    %c0_37 = arith.constant 0 : index
    %c0_38 = arith.constant 0 : index
    %c0_39 = arith.constant 0 : index
    %94 = vector.load %arg5[%c0_37, %c0_38, %c0_39] : memref<1x8x32xbf16, #tpu.memory_space<vmem>>, vector<1x8x32xbf16>
    %95 = vector.shape_cast %94 : vector<1x8x32xbf16> to vector<8x32xbf16>
    %96 = arith.extf %95 : vector<8x32xbf16> to vector<8x32xf32>
    %97 = arith.addf %93, %96 : vector<8x32xf32>
    %cst_40 = arith.constant dense<0.000000e+00> : vector<8xf32>
    %98 = vector.multi_reduction <add>, %97, %cst_40 [1] : vector<8x32xf32> to vector<8xf32>
    %99 = vector.shape_cast %98 : vector<8xf32> to vector<8x1xf32>
    %cst_41 = arith.constant 3.200000e+01 : f32
    %100 = vector.broadcast %cst_41 : f32 to vector<8x1xf32>
    %101 = arith.divf %99, %100 : vector<8x1xf32>
    %102 = vector.broadcast %101 : vector<8x1xf32> to vector<8x32xf32>
    %103 = arith.subf %97, %102 : vector<8x32xf32>
    %104 = arith.mulf %103, %103 : vector<8x32xf32>
    %cst_42 = arith.constant dense<0.000000e+00> : vector<8xf32>
    %105 = vector.multi_reduction <add>, %104, %cst_42 [1] : vector<8x32xf32> to vector<8xf32>
    %106 = vector.shape_cast %105 : vector<8xf32> to vector<8x1xf32>
    %cst_43 = arith.constant 3.200000e+01 : f32
    %107 = vector.broadcast %cst_43 : f32 to vector<8x1xf32>
    %108 = arith.divf %106, %107 : vector<8x1xf32>
    %109 = vector.broadcast %101 : vector<8x1xf32> to vector<8x32xf32>
    %110 = arith.subf %97, %109 : vector<8x32xf32>
    %cst_44 = arith.constant 9.99999974E-6 : f32
    %111 = vector.broadcast %cst_44 : f32 to vector<8x1xf32>
    %112 = arith.addf %108, %111 : vector<8x1xf32>
    %113 = math.rsqrt %112 : vector<8x1xf32>
    %114 = vector.broadcast %113 : vector<8x1xf32> to vector<8x32xf32>
    %115 = arith.mulf %110, %114 : vector<8x32xf32>
    %c0_45 = arith.constant 0 : index
    %c0_46 = arith.constant 0 : index
    %116 = vector.load %arg8[%c0_45, %c0_46] : memref<1x32xf32, #tpu.memory_space<vmem>>, vector<1x32xf32>
    %117 = vector.broadcast %116 : vector<1x32xf32> to vector<8x32xf32>
    %118 = arith.mulf %115, %117 : vector<8x32xf32>
    %c0_47 = arith.constant 0 : index
    %c0_48 = arith.constant 0 : index
    %119 = vector.load %arg9[%c0_47, %c0_48] : memref<1x32xf32, #tpu.memory_space<vmem>>, vector<1x32xf32>
    %120 = vector.broadcast %119 : vector<1x32xf32> to vector<8x32xf32>
    %121 = arith.addf %118, %120 : vector<8x32xf32>
    %122 = arith.truncf %121 : vector<8x32xf32> to vector<8x32xbf16>
    %c0_49 = arith.constant 0 : index
    %c0_50 = arith.constant 0 : index
    %c0_51 = arith.constant 0 : index
    %123 = vector.load %arg10[%c0_49, %c0_50, %c0_51] : memref<1x8x32xbf16, #tpu.memory_space<vmem>>, vector<1x8x32xbf16>
    %124 = vector.shape_cast %123 : vector<1x8x32xbf16> to vector<8x32xbf16>
    %125 = vector.shape_cast %122 : vector<8x32xbf16> to vector<1x8x32xbf16>
    tpu.vector_store %arg10[%c0_49, %c0_50, %c0_51], %125 {strides = array<i32>} : memref<1x8x32xbf16, #tpu.memory_space<vmem>>, vector<1x8x32xbf16>,
    return
  }
  func.func @transform_0(%arg0: i32, %arg1: i32) -> (i32, i32, i32) {
    %c0_i32 = arith.constant 0 : i32
    %c0_i32_0 = arith.constant 0 : i32
    return %arg0, %arg1, %c0_i32 : i32, i32, i32
  }
  func.func @transform_1(%arg0: i32, %arg1: i32) -> (i32, i32, i32) {
    %c0_i32 = arith.constant 0 : i32
    %c0_i32_0 = arith.constant 0 : i32
    %c0_i32_1 = arith.constant 0 : i32
    return %arg0, %c0_i32, %c0_i32_0 : i32, i32, i32
  }
  func.func @transform_2(%arg0: i32, %arg1: i32) -> (i32, i32, i32) {
    %c0_i32 = arith.constant 0 : i32
    %c0_i32_0 = arith.constant 0 : i32
    %c0_i32_1 = arith.constant 0 : i32
    return %arg0, %c0_i32, %c0_i32_0 : i32, i32, i32
  }
  func.func @transform_3(%arg0: i32, %arg1: i32) -> (i32, i32, i32) {
    %c0_i32 = arith.constant 0 : i32
    %c0_i32_0 = arith.constant 0 : i32
    return %arg0, %arg1, %c0_i32 : i32, i32, i32
  }
  func.func @transform_4(%arg0: i32, %arg1: i32) -> (i32, i32) {
    %c0_i32 = arith.constant 0 : i32
    %c0_i32_0 = arith.constant 0 : i32
    %c0_i32_1 = arith.constant 0 : i32
    return %c0_i32, %c0_i32_0 : i32, i32
  }
  func.func @transform_5(%arg0: i32, %arg1: i32) -> (i32, i32) {
    %c0_i32 = arith.constant 0 : i32
    %c0_i32_0 = arith.constant 0 : i32
    %c0_i32_1 = arith.constant 0 : i32
    return %c0_i32, %c0_i32_0 : i32, i32
  }
  func.func @transform_6(%arg0: i32, %arg1: i32) -> (i32, i32) {
    %c0_i32 = arith.constant 0 : i32
    %c0_i32_0 = arith.constant 0 : i32
    %c0_i32_1 = arith.constant 0 : i32
    return %c0_i32, %c0_i32_0 : i32, i32
  }
  func.func @transform_7(%arg0: i32, %arg1: i32) -> (i32, i32) {
    %c0_i32 = arith.constant 0 : i32
    %c0_i32_0 = arith.constant 0 : i32
    %c0_i32_1 = arith.constant 0 : i32
    return %c0_i32, %c0_i32_0 : i32, i32
  }
  func.func @transform_8(%arg0: i32, %arg1: i32) -> (i32, i32, i32) {
    %c0_i32 = arith.constant 0 : i32
    %c0_i32_0 = arith.constant 0 : i32
    return %arg0, %arg1, %c0_i32 : i32, i32, i32
  }
}

module attributes {stable_mosaic.version = 11 : i64} {
  func.func @_proj_split_kernel(%arg0: i32, %arg1: memref<20x32xbf16, #tpu.memory_space<vmem>>, %arg2: memref<32x64xbf16, #tpu.memory_space<vmem>>, %arg3: memref<1x64xf32, #tpu.memory_space<vmem>>, %arg4: memref<20x32xbf16, #tpu.memory_space<vmem>>, %arg5: memref<20x32xbf16, #tpu.memory_space<vmem>>) attributes {dimension_semantics = [#tpu.dimension_semantics<parallel>], iteration_bounds = array<i64: 1>, scalar_prefetch = 0 : i64, scratch_operands = 0 : i64, tpu.core_type = #tpu.core_type<tc>, window_params = [{transform_indices = @transform_0, window_bounds = array<i64: 20, 32>}, {pipeline_mode = #tpu.pipeline_mode<synchronous>, transform_indices = @transform_1, window_bounds = array<i64: 32, 64>}, {pipeline_mode = #tpu.pipeline_mode<synchronous>, transform_indices = @transform_2, window_bounds = array<i64: 1, 64>}, {transform_indices = @transform_3, window_bounds = array<i64: 20, 32>}, {transform_indices = @transform_4, window_bounds = array<i64: 20, 32>}]} {
    %c0 = arith.constant 0 : index
    %c0_0 = arith.constant 0 : index
    %0 = vector.load %arg1[%c0, %c0_0] : memref<20x32xbf16, #tpu.memory_space<vmem>>, vector<20x32xbf16>
    %c0_1 = arith.constant 0 : index
    %c0_2 = arith.constant 0 : index
    %1 = vector.load %arg2[%c0_1, %c0_2] : memref<32x64xbf16, #tpu.memory_space<vmem>>, vector<32x64xbf16>
    %cst = arith.constant dense<0.000000e+00> : vector<20x64xf32>
    %2 = tpu.matmul %0, %1, %cst {dimension_numbers = #tpu.dot_dimension_numbers<[1], [0], [0], [1], [0, 0, 1, 1], [], []>} : vector<20x32xbf16>, vector<32x64xbf16>, vector<20x64xf32> -> vector<20x64xf32>
    %c0_3 = arith.constant 0 : index
    %c0_4 = arith.constant 0 : index
    %3 = vector.load %arg3[%c0_3, %c0_4] : memref<1x64xf32, #tpu.memory_space<vmem>>, vector<1x64xf32>
    %4 = vector.broadcast %3 : vector<1x64xf32> to vector<20x64xf32>
    %5 = arith.addf %2, %4 : vector<20x64xf32>
    %6 = vector.extract_strided_slice %5 {offsets = [0, 0], sizes = [20, 32], strides = [1, 1]} : vector<20x64xf32> to vector<20x32xf32>
    %7 = arith.truncf %6 : vector<20x32xf32> to vector<20x32xbf16>
    %c0_5 = arith.constant 0 : index
    %c0_6 = arith.constant 0 : index
    %8 = vector.load %arg4[%c0_5, %c0_6] : memref<20x32xbf16, #tpu.memory_space<vmem>>, vector<20x32xbf16>
    tpu.vector_store %arg4[%c0_5, %c0_6], %7 {strides = array<i32>} : memref<20x32xbf16, #tpu.memory_space<vmem>>, vector<20x32xbf16>,
    %9 = vector.extract_strided_slice %5 {offsets = [0, 32], sizes = [20, 32], strides = [1, 1]} : vector<20x64xf32> to vector<20x32xf32>
    %10 = arith.truncf %9 : vector<20x32xf32> to vector<20x32xbf16>
    %c0_7 = arith.constant 0 : index
    %c0_8 = arith.constant 0 : index
    %11 = vector.load %arg5[%c0_7, %c0_8] : memref<20x32xbf16, #tpu.memory_space<vmem>>, vector<20x32xbf16>
    tpu.vector_store %arg5[%c0_7, %c0_8], %10 {strides = array<i32>} : memref<20x32xbf16, #tpu.memory_space<vmem>>, vector<20x32xbf16>,
    return
  }
  func.func @transform_0(%arg0: i32) -> (i32, i32) {
    %c0_i32 = arith.constant 0 : i32
    %c0_i32_0 = arith.constant 0 : i32
    return %arg0, %c0_i32 : i32, i32
  }
  func.func @transform_1(%arg0: i32) -> (i32, i32) {
    %c0_i32 = arith.constant 0 : i32
    %c0_i32_0 = arith.constant 0 : i32
    %c0_i32_1 = arith.constant 0 : i32
    return %c0_i32, %c0_i32_0 : i32, i32
  }
  func.func @transform_2(%arg0: i32) -> (i32, i32) {
    %c0_i32 = arith.constant 0 : i32
    %c0_i32_0 = arith.constant 0 : i32
    %c0_i32_1 = arith.constant 0 : i32
    return %c0_i32, %c0_i32_0 : i32, i32
  }
  func.func @transform_3(%arg0: i32) -> (i32, i32) {
    %c0_i32 = arith.constant 0 : i32
    %c0_i32_0 = arith.constant 0 : i32
    return %arg0, %c0_i32 : i32, i32
  }
  func.func @transform_4(%arg0: i32) -> (i32, i32) {
    %c0_i32 = arith.constant 0 : i32
    %c0_i32_0 = arith.constant 0 : i32
    return %arg0, %c0_i32 : i32, i32
  }
}

module attributes {stable_mosaic.version = 11 : i64} {
  func.func @_attn_fused_kernel(%arg0: i32, %arg1: i32, %arg2: memref<1x8x32xbf16, #tpu.memory_space<vmem>>, %arg3: memref<1x10x32xbf16, #tpu.memory_space<vmem>>, %arg4: memref<1x10x32xbf16, #tpu.memory_space<vmem>>, %arg5: memref<1x8x32xbf16, #tpu.memory_space<vmem>>, %arg6: memref<32x32xbf16, #tpu.memory_space<vmem>>, %arg7: memref<1x32xf32, #tpu.memory_space<vmem>>, %arg8: memref<1x32xf32, #tpu.memory_space<vmem>>, %arg9: memref<1x32xf32, #tpu.memory_space<vmem>>, %arg10: memref<1x8x32xbf16, #tpu.memory_space<vmem>>, %arg11: memref<8x32xf32, #tpu.memory_space<vmem>>) attributes {dimension_semantics = [#tpu.dimension_semantics<parallel>, #tpu.dimension_semantics<parallel>], iteration_bounds = array<i64: 2, 1>, scalar_prefetch = 0 : i64, scratch_operands = 1 : i64, tpu.core_type = #tpu.core_type<tc>, window_params = [{transform_indices = @transform_0, window_bounds = array<i64: 1, 8, 32>}, {transform_indices = @transform_1, window_bounds = array<i64: 1, 10, 32>}, {transform_indices = @transform_2, window_bounds = array<i64: 1, 10, 32>}, {transform_indices = @transform_3, window_bounds = array<i64: 1, 8, 32>}, {pipeline_mode = #tpu.pipeline_mode<synchronous>, transform_indices = @transform_4, window_bounds = array<i64: 32, 32>}, {pipeline_mode = #tpu.pipeline_mode<synchronous>, transform_indices = @transform_5, window_bounds = array<i64: 1, 32>}, {pipeline_mode = #tpu.pipeline_mode<synchronous>, transform_indices = @transform_6, window_bounds = array<i64: 1, 32>}, {pipeline_mode = #tpu.pipeline_mode<synchronous>, transform_indices = @transform_7, window_bounds = array<i64: 1, 32>}, {transform_indices = @transform_8, window_bounds = array<i64: 1, 8, 32>}]} {
    %c0 = arith.constant 0 : index
    %c0_0 = arith.constant 0 : index
    %c0_1 = arith.constant 0 : index
    %0 = vector.load %arg2[%c0, %c0_0, %c0_1] : memref<1x8x32xbf16, #tpu.memory_space<vmem>>, vector<1x8x32xbf16>
    %1 = vector.shape_cast %0 : vector<1x8x32xbf16> to vector<8x32xbf16>
    %c0_2 = arith.constant 0 : index
    %c0_3 = arith.constant 0 : index
    %c0_4 = arith.constant 0 : index
    %2 = vector.load %arg3[%c0_2, %c0_3, %c0_4] : memref<1x10x32xbf16, #tpu.memory_space<vmem>>, vector<1x10x32xbf16>
    %3 = vector.shape_cast %2 : vector<1x10x32xbf16> to vector<10x32xbf16>
    %c0_5 = arith.constant 0 : index
    %c0_6 = arith.constant 0 : index
    %c0_7 = arith.constant 0 : index
    %4 = vector.load %arg4[%c0_5, %c0_6, %c0_7] : memref<1x10x32xbf16, #tpu.memory_space<vmem>>, vector<1x10x32xbf16>
    %5 = vector.shape_cast %4 : vector<1x10x32xbf16> to vector<10x32xbf16>
    %6 = vector.extract_strided_slice %1 {offsets = [0, 0], sizes = [8, 8], strides = [1, 1]} : vector<8x32xbf16> to vector<8x8xbf16>
    %7 = vector.extract_strided_slice %3 {offsets = [0, 0], sizes = [10, 8], strides = [1, 1]} : vector<10x32xbf16> to vector<10x8xbf16>
    %8 = vector.extract_strided_slice %5 {offsets = [0, 0], sizes = [10, 8], strides = [1, 1]} : vector<10x32xbf16> to vector<10x8xbf16>
    %cst = arith.constant dense<0.000000e+00> : vector<8x10xf32>
    %9 = tpu.matmul %6, %7, %cst {dimension_numbers = #tpu.dot_dimension_numbers<[1], [1], [0], [0], [0, 0, 1, 0], [], []>} : vector<8x8xbf16>, vector<10x8xbf16>, vector<8x10xf32> -> vector<8x10xf32>
    %cst_8 = arith.constant dense<0xFF800000> : vector<8xf32>
    %10 = vector.multi_reduction <maximumf>, %9, %cst_8 [1] : vector<8x10xf32> to vector<8xf32>
    %11 = vector.shape_cast %10 : vector<8xf32> to vector<8x1xf32>
    %12 = vector.broadcast %11 : vector<8x1xf32> to vector<8x10xf32>
    %13 = arith.subf %9, %12 : vector<8x10xf32>
    %14 = math.exp %13 : vector<8x10xf32>
    %cst_9 = arith.constant dense<0.000000e+00> : vector<8xf32>
    %15 = vector.multi_reduction <add>, %14, %cst_9 [1] : vector<8x10xf32> to vector<8xf32>
    %16 = vector.shape_cast %15 : vector<8xf32> to vector<8x1xf32>
    %17 = tpu.reciprocal %16 {approx = true} : vector<8x1xf32> -> vector<8x1xf32>
    %18 = vector.broadcast %17 : vector<8x1xf32> to vector<8x10xf32>
    %19 = arith.mulf %14, %18 : vector<8x10xf32>
    %20 = arith.truncf %19 : vector<8x10xf32> to vector<8x10xbf16>
    %cst_10 = arith.constant dense<0.000000e+00> : vector<8x8xf32>
    %21 = tpu.matmul %20, %8, %cst_10 {dimension_numbers = #tpu.dot_dimension_numbers<[1], [0], [0], [1], [0, 0, 1, 1], [], []>} : vector<8x10xbf16>, vector<10x8xbf16>, vector<8x8xf32> -> vector<8x8xf32>
    %c0_11 = arith.constant 0 : index
    %c0_12 = arith.constant 0 : index
    %22 = vector.load %arg11[%c0_11, %c0_12] : memref<8x32xf32, #tpu.memory_space<vmem>>, vector<8x8xf32>
    tpu.vector_store %arg11[%c0_11, %c0_12], %21 {strides = array<i32>} : memref<8x32xf32, #tpu.memory_space<vmem>>, vector<8x8xf32>,
    %23 = vector.extract_strided_slice %1 {offsets = [0, 8], sizes = [8, 8], strides = [1, 1]} : vector<8x32xbf16> to vector<8x8xbf16>
    %24 = vector.extract_strided_slice %3 {offsets = [0, 8], sizes = [10, 8], strides = [1, 1]} : vector<10x32xbf16> to vector<10x8xbf16>
    %25 = vector.extract_strided_slice %5 {offsets = [0, 8], sizes = [10, 8], strides = [1, 1]} : vector<10x32xbf16> to vector<10x8xbf16>
    %cst_13 = arith.constant dense<0.000000e+00> : vector<8x10xf32>
    %26 = tpu.matmul %23, %24, %cst_13 {dimension_numbers = #tpu.dot_dimension_numbers<[1], [1], [0], [0], [0, 0, 1, 0], [], []>} : vector<8x8xbf16>, vector<10x8xbf16>, vector<8x10xf32> -> vector<8x10xf32>
    %cst_14 = arith.constant dense<0xFF800000> : vector<8xf32>
    %27 = vector.multi_reduction <maximumf>, %26, %cst_14 [1] : vector<8x10xf32> to vector<8xf32>
    %28 = vector.shape_cast %27 : vector<8xf32> to vector<8x1xf32>
    %29 = vector.broadcast %28 : vector<8x1xf32> to vector<8x10xf32>
    %30 = arith.subf %26, %29 : vector<8x10xf32>
    %31 = math.exp %30 : vector<8x10xf32>
    %cst_15 = arith.constant dense<0.000000e+00> : vector<8xf32>
    %32 = vector.multi_reduction <add>, %31, %cst_15 [1] : vector<8x10xf32> to vector<8xf32>
    %33 = vector.shape_cast %32 : vector<8xf32> to vector<8x1xf32>
    %34 = tpu.reciprocal %33 {approx = true} : vector<8x1xf32> -> vector<8x1xf32>
    %35 = vector.broadcast %34 : vector<8x1xf32> to vector<8x10xf32>
    %36 = arith.mulf %31, %35 : vector<8x10xf32>
    %37 = arith.truncf %36 : vector<8x10xf32> to vector<8x10xbf16>
    %cst_16 = arith.constant dense<0.000000e+00> : vector<8x8xf32>
    %38 = tpu.matmul %37, %25, %cst_16 {dimension_numbers = #tpu.dot_dimension_numbers<[1], [0], [0], [1], [0, 0, 1, 1], [], []>} : vector<8x10xbf16>, vector<10x8xbf16>, vector<8x8xf32> -> vector<8x8xf32>
    %c0_17 = arith.constant 0 : index
    %c8 = arith.constant 8 : index
    %39 = vector.load %arg11[%c0_17, %c8] : memref<8x32xf32, #tpu.memory_space<vmem>>, vector<8x8xf32>
    tpu.vector_store %arg11[%c0_17, %c8], %38 {strides = array<i32>} : memref<8x32xf32, #tpu.memory_space<vmem>>, vector<8x8xf32>,
    %40 = vector.extract_strided_slice %1 {offsets = [0, 16], sizes = [8, 8], strides = [1, 1]} : vector<8x32xbf16> to vector<8x8xbf16>
    %41 = vector.extract_strided_slice %3 {offsets = [0, 16], sizes = [10, 8], strides = [1, 1]} : vector<10x32xbf16> to vector<10x8xbf16>
    %42 = vector.extract_strided_slice %5 {offsets = [0, 16], sizes = [10, 8], strides = [1, 1]} : vector<10x32xbf16> to vector<10x8xbf16>
    %cst_18 = arith.constant dense<0.000000e+00> : vector<8x10xf32>
    %43 = tpu.matmul %40, %41, %cst_18 {dimension_numbers = #tpu.dot_dimension_numbers<[1], [1], [0], [0], [0, 0, 1, 0], [], []>} : vector<8x8xbf16>, vector<10x8xbf16>, vector<8x10xf32> -> vector<8x10xf32>
    %cst_19 = arith.constant dense<0xFF800000> : vector<8xf32>
    %44 = vector.multi_reduction <maximumf>, %43, %cst_19 [1] : vector<8x10xf32> to vector<8xf32>
    %45 = vector.shape_cast %44 : vector<8xf32> to vector<8x1xf32>
    %46 = vector.broadcast %45 : vector<8x1xf32> to vector<8x10xf32>
    %47 = arith.subf %43, %46 : vector<8x10xf32>
    %48 = math.exp %47 : vector<8x10xf32>
    %cst_20 = arith.constant dense<0.000000e+00> : vector<8xf32>
    %49 = vector.multi_reduction <add>, %48, %cst_20 [1] : vector<8x10xf32> to vector<8xf32>
    %50 = vector.shape_cast %49 : vector<8xf32> to vector<8x1xf32>
    %51 = tpu.reciprocal %50 {approx = true} : vector<8x1xf32> -> vector<8x1xf32>
    %52 = vector.broadcast %51 : vector<8x1xf32> to vector<8x10xf32>
    %53 = arith.mulf %48, %52 : vector<8x10xf32>
    %54 = arith.truncf %53 : vector<8x10xf32> to vector<8x10xbf16>
    %cst_21 = arith.constant dense<0.000000e+00> : vector<8x8xf32>
    %55 = tpu.matmul %54, %42, %cst_21 {dimension_numbers = #tpu.dot_dimension_numbers<[1], [0], [0], [1], [0, 0, 1, 1], [], []>} : vector<8x10xbf16>, vector<10x8xbf16>, vector<8x8xf32> -> vector<8x8xf32>
    %c0_22 = arith.constant 0 : index
    %c16 = arith.constant 16 : index
    %56 = vector.load %arg11[%c0_22, %c16] : memref<8x32xf32, #tpu.memory_space<vmem>>, vector<8x8xf32>
    tpu.vector_store %arg11[%c0_22, %c16], %55 {strides = array<i32>} : memref<8x32xf32, #tpu.memory_space<vmem>>, vector<8x8xf32>,
    %57 = vector.extract_strided_slice %1 {offsets = [0, 24], sizes = [8, 8], strides = [1, 1]} : vector<8x32xbf16> to vector<8x8xbf16>
    %58 = vector.extract_strided_slice %3 {offsets = [0, 24], sizes = [10, 8], strides = [1, 1]} : vector<10x32xbf16> to vector<10x8xbf16>
    %59 = vector.extract_strided_slice %5 {offsets = [0, 24], sizes = [10, 8], strides = [1, 1]} : vector<10x32xbf16> to vector<10x8xbf16>
    %cst_23 = arith.constant dense<0.000000e+00> : vector<8x10xf32>
    %60 = tpu.matmul %57, %58, %cst_23 {dimension_numbers = #tpu.dot_dimension_numbers<[1], [1], [0], [0], [0, 0, 1, 0], [], []>} : vector<8x8xbf16>, vector<10x8xbf16>, vector<8x10xf32> -> vector<8x10xf32>
    %cst_24 = arith.constant dense<0xFF800000> : vector<8xf32>
    %61 = vector.multi_reduction <maximumf>, %60, %cst_24 [1] : vector<8x10xf32> to vector<8xf32>
    %62 = vector.shape_cast %61 : vector<8xf32> to vector<8x1xf32>
    %63 = vector.broadcast %62 : vector<8x1xf32> to vector<8x10xf32>
    %64 = arith.subf %60, %63 : vector<8x10xf32>
    %65 = math.exp %64 : vector<8x10xf32>
    %cst_25 = arith.constant dense<0.000000e+00> : vector<8xf32>
    %66 = vector.multi_reduction <add>, %65, %cst_25 [1] : vector<8x10xf32> to vector<8xf32>
    %67 = vector.shape_cast %66 : vector<8xf32> to vector<8x1xf32>
    %68 = tpu.reciprocal %67 {approx = true} : vector<8x1xf32> -> vector<8x1xf32>
    %69 = vector.broadcast %68 : vector<8x1xf32> to vector<8x10xf32>
    %70 = arith.mulf %65, %69 : vector<8x10xf32>
    %71 = arith.truncf %70 : vector<8x10xf32> to vector<8x10xbf16>
    %cst_26 = arith.constant dense<0.000000e+00> : vector<8x8xf32>
    %72 = tpu.matmul %71, %59, %cst_26 {dimension_numbers = #tpu.dot_dimension_numbers<[1], [0], [0], [1], [0, 0, 1, 1], [], []>} : vector<8x10xbf16>, vector<10x8xbf16>, vector<8x8xf32> -> vector<8x8xf32>
    %c0_27 = arith.constant 0 : index
    %c24 = arith.constant 24 : index
    %73 = vector.load %arg11[%c0_27, %c24] : memref<8x32xf32, #tpu.memory_space<vmem>>, vector<8x8xf32>
    tpu.vector_store %arg11[%c0_27, %c24], %72 {strides = array<i32>} : memref<8x32xf32, #tpu.memory_space<vmem>>, vector<8x8xf32>,
    %c0_28 = arith.constant 0 : index
    %c0_29 = arith.constant 0 : index
    %74 = vector.load %arg11[%c0_28, %c0_29] : memref<8x32xf32, #tpu.memory_space<vmem>>, vector<8x32xf32>
    %75 = arith.truncf %74 : vector<8x32xf32> to vector<8x32xbf16>
    %c0_30 = arith.constant 0 : index
    %c0_31 = arith.constant 0 : index
    %76 = vector.load %arg6[%c0_30, %c0_31] : memref<32x32xbf16, #tpu.memory_space<vmem>>, vector<32x32xbf16>
    %cst_32 = arith.constant dense<0.000000e+00> : vector<8x32xf32>
    %77 = tpu.matmul %75, %76, %cst_32 {dimension_numbers = #tpu.dot_dimension_numbers<[1], [0], [0], [1], [0, 0, 1, 1], [], []>} : vector<8x32xbf16>, vector<32x32xbf16>, vector<8x32xf32> -> vector<8x32xf32>
    %c0_33 = arith.constant 0 : index
    %c0_34 = arith.constant 0 : index
    %78 = vector.load %arg7[%c0_33, %c0_34] : memref<1x32xf32, #tpu.memory_space<vmem>>, vector<1x32xf32>
    %79 = vector.broadcast %78 : vector<1x32xf32> to vector<8x32xf32>
    %80 = arith.addf %77, %79 : vector<8x32xf32>
    %c0_35 = arith.constant 0 : index
    %c0_36 = arith.constant 0 : index
    %c0_37 = arith.constant 0 : index
    %81 = vector.load %arg5[%c0_35, %c0_36, %c0_37] : memref<1x8x32xbf16, #tpu.memory_space<vmem>>, vector<1x8x32xbf16>
    %82 = vector.shape_cast %81 : vector<1x8x32xbf16> to vector<8x32xbf16>
    %83 = arith.extf %82 : vector<8x32xbf16> to vector<8x32xf32>
    %84 = arith.addf %80, %83 : vector<8x32xf32>
    %cst_38 = arith.constant dense<0.000000e+00> : vector<8xf32>
    %85 = vector.multi_reduction <add>, %84, %cst_38 [1] : vector<8x32xf32> to vector<8xf32>
    %86 = vector.shape_cast %85 : vector<8xf32> to vector<8x1xf32>
    %cst_39 = arith.constant 3.200000e+01 : f32
    %87 = vector.broadcast %cst_39 : f32 to vector<8x1xf32>
    %88 = arith.divf %86, %87 : vector<8x1xf32>
    %89 = vector.broadcast %88 : vector<8x1xf32> to vector<8x32xf32>
    %90 = arith.subf %84, %89 : vector<8x32xf32>
    %91 = arith.mulf %90, %90 : vector<8x32xf32>
    %cst_40 = arith.constant dense<0.000000e+00> : vector<8xf32>
    %92 = vector.multi_reduction <add>, %91, %cst_40 [1] : vector<8x32xf32> to vector<8xf32>
    %93 = vector.shape_cast %92 : vector<8xf32> to vector<8x1xf32>
    %cst_41 = arith.constant 3.200000e+01 : f32
    %94 = vector.broadcast %cst_41 : f32 to vector<8x1xf32>
    %95 = arith.divf %93, %94 : vector<8x1xf32>
    %96 = vector.broadcast %88 : vector<8x1xf32> to vector<8x32xf32>
    %97 = arith.subf %84, %96 : vector<8x32xf32>
    %cst_42 = arith.constant 9.99999974E-6 : f32
    %98 = vector.broadcast %cst_42 : f32 to vector<8x1xf32>
    %99 = arith.addf %95, %98 : vector<8x1xf32>
    %100 = math.rsqrt %99 : vector<8x1xf32>
    %101 = vector.broadcast %100 : vector<8x1xf32> to vector<8x32xf32>
    %102 = arith.mulf %97, %101 : vector<8x32xf32>
    %c0_43 = arith.constant 0 : index
    %c0_44 = arith.constant 0 : index
    %103 = vector.load %arg8[%c0_43, %c0_44] : memref<1x32xf32, #tpu.memory_space<vmem>>, vector<1x32xf32>
    %104 = vector.broadcast %103 : vector<1x32xf32> to vector<8x32xf32>
    %105 = arith.mulf %102, %104 : vector<8x32xf32>
    %c0_45 = arith.constant 0 : index
    %c0_46 = arith.constant 0 : index
    %106 = vector.load %arg9[%c0_45, %c0_46] : memref<1x32xf32, #tpu.memory_space<vmem>>, vector<1x32xf32>
    %107 = vector.broadcast %106 : vector<1x32xf32> to vector<8x32xf32>
    %108 = arith.addf %105, %107 : vector<8x32xf32>
    %109 = arith.truncf %108 : vector<8x32xf32> to vector<8x32xbf16>
    %c0_47 = arith.constant 0 : index
    %c0_48 = arith.constant 0 : index
    %c0_49 = arith.constant 0 : index
    %110 = vector.load %arg10[%c0_47, %c0_48, %c0_49] : memref<1x8x32xbf16, #tpu.memory_space<vmem>>, vector<1x8x32xbf16>
    %111 = vector.shape_cast %110 : vector<1x8x32xbf16> to vector<8x32xbf16>
    %112 = vector.shape_cast %109 : vector<8x32xbf16> to vector<1x8x32xbf16>
    tpu.vector_store %arg10[%c0_47, %c0_48, %c0_49], %112 {strides = array<i32>} : memref<1x8x32xbf16, #tpu.memory_space<vmem>>, vector<1x8x32xbf16>,
    return
  }
  func.func @transform_0(%arg0: i32, %arg1: i32) -> (i32, i32, i32) {
    %c0_i32 = arith.constant 0 : i32
    %c0_i32_0 = arith.constant 0 : i32
    return %arg0, %arg1, %c0_i32 : i32, i32, i32
  }
  func.func @transform_1(%arg0: i32, %arg1: i32) -> (i32, i32, i32) {
    %c0_i32 = arith.constant 0 : i32
    %c0_i32_0 = arith.constant 0 : i32
    %c0_i32_1 = arith.constant 0 : i32
    return %arg0, %c0_i32, %c0_i32_0 : i32, i32, i32
  }
  func.func @transform_2(%arg0: i32, %arg1: i32) -> (i32, i32, i32) {
    %c0_i32 = arith.constant 0 : i32
    %c0_i32_0 = arith.constant 0 : i32
    %c0_i32_1 = arith.constant 0 : i32
    return %arg0, %c0_i32, %c0_i32_0 : i32, i32, i32
  }
  func.func @transform_3(%arg0: i32, %arg1: i32) -> (i32, i32, i32) {
    %c0_i32 = arith.constant 0 : i32
    %c0_i32_0 = arith.constant 0 : i32
    return %arg0, %arg1, %c0_i32 : i32, i32, i32
  }
  func.func @transform_4(%arg0: i32, %arg1: i32) -> (i32, i32) {
    %c0_i32 = arith.constant 0 : i32
    %c0_i32_0 = arith.constant 0 : i32
    %c0_i32_1 = arith.constant 0 : i32
    return %c0_i32, %c0_i32_0 : i32, i32
  }
  func.func @transform_5(%arg0: i32, %arg1: i32) -> (i32, i32) {
    %c0_i32 = arith.constant 0 : i32
    %c0_i32_0 = arith.constant 0 : i32
    %c0_i32_1 = arith.constant 0 : i32
    return %c0_i32, %c0_i32_0 : i32, i32
  }
  func.func @transform_6(%arg0: i32, %arg1: i32) -> (i32, i32) {
    %c0_i32 = arith.constant 0 : i32
    %c0_i32_0 = arith.constant 0 : i32
    %c0_i32_1 = arith.constant 0 : i32
    return %c0_i32, %c0_i32_0 : i32, i32
  }
  func.func @transform_7(%arg0: i32, %arg1: i32) -> (i32, i32) {
    %c0_i32 = arith.constant 0 : i32
    %c0_i32_0 = arith.constant 0 : i32
    %c0_i32_1 = arith.constant 0 : i32
    return %c0_i32, %c0_i32_0 : i32, i32
  }
  func.func @transform_8(%arg0: i32, %arg1: i32) -> (i32, i32, i32) {
    %c0_i32 = arith.constant 0 : i32
    %c0_i32_0 = arith.constant 0 : i32
    return %arg0, %arg1, %c0_i32 : i32, i32, i32
  }
}

module attributes {stable_mosaic.version = 11 : i64} {
  func.func @_ffn_add_ln_kernel(%arg0: i32, %arg1: memref<16x32xbf16, #tpu.memory_space<vmem>>, %arg2: memref<32x64xbf16, #tpu.memory_space<vmem>>, %arg3: memref<1x64xf32, #tpu.memory_space<vmem>>, %arg4: memref<64x32xbf16, #tpu.memory_space<vmem>>, %arg5: memref<1x32xf32, #tpu.memory_space<vmem>>, %arg6: memref<1x32xf32, #tpu.memory_space<vmem>>, %arg7: memref<1x32xf32, #tpu.memory_space<vmem>>, %arg8: memref<16x32xbf16, #tpu.memory_space<vmem>>) attributes {dimension_semantics = [#tpu.dimension_semantics<parallel>], iteration_bounds = array<i64: 1>, scalar_prefetch = 0 : i64, scratch_operands = 0 : i64, tpu.core_type = #tpu.core_type<tc>, window_params = [{transform_indices = @transform_0, window_bounds = array<i64: 16, 32>}, {pipeline_mode = #tpu.pipeline_mode<synchronous>, transform_indices = @transform_1, window_bounds = array<i64: 32, 64>}, {pipeline_mode = #tpu.pipeline_mode<synchronous>, transform_indices = @transform_2, window_bounds = array<i64: 1, 64>}, {pipeline_mode = #tpu.pipeline_mode<synchronous>, transform_indices = @transform_3, window_bounds = array<i64: 64, 32>}, {pipeline_mode = #tpu.pipeline_mode<synchronous>, transform_indices = @transform_4, window_bounds = array<i64: 1, 32>}, {pipeline_mode = #tpu.pipeline_mode<synchronous>, transform_indices = @transform_5, window_bounds = array<i64: 1, 32>}, {pipeline_mode = #tpu.pipeline_mode<synchronous>, transform_indices = @transform_6, window_bounds = array<i64: 1, 32>}, {transform_indices = @transform_7, window_bounds = array<i64: 16, 32>}]} {
    %c0 = arith.constant 0 : index
    %c0_0 = arith.constant 0 : index
    %0 = vector.load %arg1[%c0, %c0_0] : memref<16x32xbf16, #tpu.memory_space<vmem>>, vector<16x32xbf16>
    %c0_1 = arith.constant 0 : index
    %c0_2 = arith.constant 0 : index
    %1 = vector.load %arg2[%c0_1, %c0_2] : memref<32x64xbf16, #tpu.memory_space<vmem>>, vector<32x64xbf16>
    %cst = arith.constant dense<0.000000e+00> : vector<16x64xf32>
    %2 = tpu.matmul %0, %1, %cst {dimension_numbers = #tpu.dot_dimension_numbers<[1], [0], [0], [1], [0, 0, 1, 1], [], []>} : vector<16x32xbf16>, vector<32x64xbf16>, vector<16x64xf32> -> vector<16x64xf32>
    %c0_3 = arith.constant 0 : index
    %c0_4 = arith.constant 0 : index
    %3 = vector.load %arg3[%c0_3, %c0_4] : memref<1x64xf32, #tpu.memory_space<vmem>>, vector<1x64xf32>
    %4 = vector.broadcast %3 : vector<1x64xf32> to vector<16x64xf32>
    %5 = arith.addf %2, %4 : vector<16x64xf32>
    %cst_5 = arith.constant 0.000000e+00 : f32
    %6 = vector.broadcast %cst_5 : f32 to vector<16x64xf32>
    %7 = arith.maximumf %5, %6 : vector<16x64xf32>
    %8 = arith.truncf %7 : vector<16x64xf32> to vector<16x64xbf16>
    %c0_6 = arith.constant 0 : index
    %c0_7 = arith.constant 0 : index
    %9 = vector.load %arg4[%c0_6, %c0_7] : memref<64x32xbf16, #tpu.memory_space<vmem>>, vector<64x32xbf16>
    %cst_8 = arith.constant dense<0.000000e+00> : vector<16x32xf32>
    %10 = tpu.matmul %8, %9, %cst_8 {dimension_numbers = #tpu.dot_dimension_numbers<[1], [0], [0], [1], [0, 0, 1, 1], [], []>} : vector<16x64xbf16>, vector<64x32xbf16>, vector<16x32xf32> -> vector<16x32xf32>
    %c0_9 = arith.constant 0 : index
    %c0_10 = arith.constant 0 : index
    %11 = vector.load %arg5[%c0_9, %c0_10] : memref<1x32xf32, #tpu.memory_space<vmem>>, vector<1x32xf32>
    %12 = vector.broadcast %11 : vector<1x32xf32> to vector<16x32xf32>
    %13 = arith.addf %10, %12 : vector<16x32xf32>
    %14 = arith.extf %0 : vector<16x32xbf16> to vector<16x32xf32>
    %15 = arith.addf %13, %14 : vector<16x32xf32>
    %cst_11 = arith.constant dense<0.000000e+00> : vector<16xf32>
    %16 = vector.multi_reduction <add>, %15, %cst_11 [1] : vector<16x32xf32> to vector<16xf32>
    %17 = vector.shape_cast %16 : vector<16xf32> to vector<16x1xf32>
    %cst_12 = arith.constant 3.200000e+01 : f32
    %18 = vector.broadcast %cst_12 : f32 to vector<16x1xf32>
    %19 = arith.divf %17, %18 : vector<16x1xf32>
    %20 = vector.broadcast %19 : vector<16x1xf32> to vector<16x32xf32>
    %21 = arith.subf %15, %20 : vector<16x32xf32>
    %22 = arith.mulf %21, %21 : vector<16x32xf32>
    %cst_13 = arith.constant dense<0.000000e+00> : vector<16xf32>
    %23 = vector.multi_reduction <add>, %22, %cst_13 [1] : vector<16x32xf32> to vector<16xf32>
    %24 = vector.shape_cast %23 : vector<16xf32> to vector<16x1xf32>
    %cst_14 = arith.constant 3.200000e+01 : f32
    %25 = vector.broadcast %cst_14 : f32 to vector<16x1xf32>
    %26 = arith.divf %24, %25 : vector<16x1xf32>
    %27 = vector.broadcast %19 : vector<16x1xf32> to vector<16x32xf32>
    %28 = arith.subf %15, %27 : vector<16x32xf32>
    %cst_15 = arith.constant 9.99999974E-6 : f32
    %29 = vector.broadcast %cst_15 : f32 to vector<16x1xf32>
    %30 = arith.addf %26, %29 : vector<16x1xf32>
    %31 = math.rsqrt %30 : vector<16x1xf32>
    %32 = vector.broadcast %31 : vector<16x1xf32> to vector<16x32xf32>
    %33 = arith.mulf %28, %32 : vector<16x32xf32>
    %c0_16 = arith.constant 0 : index
    %c0_17 = arith.constant 0 : index
    %34 = vector.load %arg6[%c0_16, %c0_17] : memref<1x32xf32, #tpu.memory_space<vmem>>, vector<1x32xf32>
    %35 = vector.broadcast %34 : vector<1x32xf32> to vector<16x32xf32>
    %36 = arith.mulf %33, %35 : vector<16x32xf32>
    %c0_18 = arith.constant 0 : index
    %c0_19 = arith.constant 0 : index
    %37 = vector.load %arg7[%c0_18, %c0_19] : memref<1x32xf32, #tpu.memory_space<vmem>>, vector<1x32xf32>
    %38 = vector.broadcast %37 : vector<1x32xf32> to vector<16x32xf32>
    %39 = arith.addf %36, %38 : vector<16x32xf32>
    %40 = arith.truncf %39 : vector<16x32xf32> to vector<16x32xbf16>
    %c0_20 = arith.constant 0 : index
    %c0_21 = arith.constant 0 : index
    %41 = vector.load %arg8[%c0_20, %c0_21] : memref<16x32xbf16, #tpu.memory_space<vmem>>, vector<16x32xbf16>
    tpu.vector_store %arg8[%c0_20, %c0_21], %40 {strides = array<i32>} : memref<16x32xbf16, #tpu.memory_space<vmem>>, vector<16x32xbf16>,
    return
  }
  func.func @transform_0(%arg0: i32) -> (i32, i32) {
    %c0_i32 = arith.constant 0 : i32
    %c0_i32_0 = arith.constant 0 : i32
    return %arg0, %c0_i32 : i32, i32
  }
  func.func @transform_1(%arg0: i32) -> (i32, i32) {
    %c0_i32 = arith.constant 0 : i32
    %c0_i32_0 = arith.constant 0 : i32
    %c0_i32_1 = arith.constant 0 : i32
    return %c0_i32, %c0_i32_0 : i32, i32
  }
  func.func @transform_2(%arg0: i32) -> (i32, i32) {
    %c0_i32 = arith.constant 0 : i32
    %c0_i32_0 = arith.constant 0 : i32
    %c0_i32_1 = arith.constant 0 : i32
    return %c0_i32, %c0_i32_0 : i32, i32
  }
  func.func @transform_3(%arg0: i32) -> (i32, i32) {
    %c0_i32 = arith.constant 0 : i32
    %c0_i32_0 = arith.constant 0 : i32
    %c0_i32_1 = arith.constant 0 : i32
    return %c0_i32, %c0_i32_0 : i32, i32
  }
  func.func @transform_4(%arg0: i32) -> (i32, i32) {
    %c0_i32 = arith.constant 0 : i32
    %c0_i32_0 = arith.constant 0 : i32
    %c0_i32_1 = arith.constant 0 : i32
    return %c0_i32, %c0_i32_0 : i32, i32
  }
  func.func @transform_5(%arg0: i32) -> (i32, i32) {
    %c0_i32 = arith.constant 0 : i32
    %c0_i32_0 = arith.constant 0 : i32
    %c0_i32_1 = arith.constant 0 : i32
    return %c0_i32, %c0_i32_0 : i32, i32
  }
  func.func @transform_6(%arg0: i32) -> (i32, i32) {
    %c0_i32 = arith.constant 0 : i32
    %c0_i32_0 = arith.constant 0 : i32
    %c0_i32_1 = arith.constant 0 : i32
    return %c0_i32, %c0_i32_0 : i32, i32
  }
  func.func @transform_7(%arg0: i32) -> (i32, i32) {
    %c0_i32 = arith.constant 0 : i32
    %c0_i32_0 = arith.constant 0 : i32
    return %arg0, %c0_i32 : i32, i32
  }
}

module attributes {stable_mosaic.version = 11 : i64} {
  func.func @_fcout_kernel(%arg0: i32, %arg1: i32, %arg2: memref<16x32xbf16, #tpu.memory_space<vmem>>, %arg3: memref<50x32xbf16, #tpu.memory_space<vmem>>, %arg4: memref<1x50xf32, #tpu.memory_space<vmem>>, %arg5: memref<16x50xbf16, #tpu.memory_space<vmem>>) attributes {dimension_semantics = [#tpu.dimension_semantics<parallel>, #tpu.dimension_semantics<parallel>], iteration_bounds = array<i64: 1, 1>, scalar_prefetch = 0 : i64, scratch_operands = 0 : i64, tpu.core_type = #tpu.core_type<tc>, window_params = [{transform_indices = @transform_0, window_bounds = array<i64: 16, 32>}, {transform_indices = @transform_1, window_bounds = array<i64: 50, 32>}, {transform_indices = @transform_2, window_bounds = array<i64: 1, 50>}, {transform_indices = @transform_3, window_bounds = array<i64: 16, 50>}]} {
    %c0 = arith.constant 0 : index
    %c0_0 = arith.constant 0 : index
    %0 = vector.load %arg2[%c0, %c0_0] : memref<16x32xbf16, #tpu.memory_space<vmem>>, vector<16x32xbf16>
    %c0_1 = arith.constant 0 : index
    %c0_2 = arith.constant 0 : index
    %1 = vector.load %arg3[%c0_1, %c0_2] : memref<50x32xbf16, #tpu.memory_space<vmem>>, vector<50x32xbf16>
    %cst = arith.constant dense<0.000000e+00> : vector<16x50xf32>
    %2 = tpu.matmul %0, %1, %cst {dimension_numbers = #tpu.dot_dimension_numbers<[1], [1], [0], [0], [0, 0, 1, 0], [], []>} : vector<16x32xbf16>, vector<50x32xbf16>, vector<16x50xf32> -> vector<16x50xf32>
    %c0_3 = arith.constant 0 : index
    %c0_4 = arith.constant 0 : index
    %3 = vector.load %arg4[%c0_3, %c0_4] : memref<1x50xf32, #tpu.memory_space<vmem>>, vector<1x50xf32>
    %4 = vector.broadcast %3 : vector<1x50xf32> to vector<16x50xf32>
    %5 = arith.addf %2, %4 : vector<16x50xf32>
    %6 = arith.truncf %5 : vector<16x50xf32> to vector<16x50xbf16>
    %c0_5 = arith.constant 0 : index
    %c0_6 = arith.constant 0 : index
    %7 = vector.load %arg5[%c0_5, %c0_6] : memref<16x50xbf16, #tpu.memory_space<vmem>>, vector<16x50xbf16>
    tpu.vector_store %arg5[%c0_5, %c0_6], %6 {strides = array<i32>} : memref<16x50xbf16, #tpu.memory_space<vmem>>, vector<16x50xbf16>,
    return
  }
  func.func @transform_0(%arg0: i32, %arg1: i32) -> (i32, i32) {
    %c0_i32 = arith.constant 0 : i32
    %c0_i32_0 = arith.constant 0 : i32
    return %arg1, %c0_i32 : i32, i32
  }
  func.func @transform_1(%arg0: i32, %arg1: i32) -> (i32, i32) {
    %c0_i32 = arith.constant 0 : i32
    %c0_i32_0 = arith.constant 0 : i32
    return %arg0, %c0_i32 : i32, i32
  }
  func.func @transform_2(%arg0: i32, %arg1: i32) -> (i32, i32) {
    %c0_i32 = arith.constant 0 : i32
    %c0_i32_0 = arith.constant 0 : i32
    return %c0_i32, %arg0 : i32, i32
  }
  func.func @transform_3(%arg0: i32, %arg1: i32) -> (i32, i32) {
    %c0_i32 = arith.constant 0 : i32
    return %arg1, %arg0 : i32, i32
  }
}

</mosaic_0001>

<bundles_post_ra>
// kernel: fwd.15
= control target key start
LH: loop header
LB: loop body
LE: loop exit
PB: predicated region body
PF: predicated region fallthrough
CT: control target
= control target key end

     0   :  { %v130_v0 = vmov 0.0   ;;  %vm131_vm0 = vmmov 0   ;;  %vm45_vm1 = vcmask 261120   ;;  %vm98_vm2 = vcmask 257024   ;;  %s170_s1 = inlined_call_operand.vmem [shape: bf16[32,32], index: 1, kind: input, shape index: {}]   ;;  %s171_s0 = inlined_call_operand.vmem [shape: bf16[16,32], index: 0, kind: input, shape index: {}]   ;;  %s172_s2 = inlined_call_operand.vmem [shape: f32[1,32], index: 2, kind: input, shape index: {}]   ;;  %s173_s3 = inlined_call_operand.vmem [shape: bf16[16,32], index: 3, kind: output, shape index: {}]  }
   0x1   :  { %117 = vmatprep.subr.bf16.mxu0 %v130_v0  ;;  %v127_v1 = vld [vmem:[%s170_s1 + $0x8] sm:$0xff]   ;;  %121 = vmatprep.mubr.msk.bf16.mxu0 %vm131_vm0, %v130_v0  ;;  %v128_v2 = vld [vmem:[%s170_s1] sm:$0xff]  }
   0x2   :  { %118 = vmatpush3.bf16.msra.mxu0 %v127_v1  ;;  %v129_v3 = vld [vmem:[%s171_s0] sm:$0xff]  }
   0x3   :  { %119 = vmatprep.subr.bf16.mxu0 %v130_v0  ;;  %v105_v4 = vld [vmem:[%s172_s2] ss:$0 sm:$0xff] }
   0x6   :  { %120 = vmatpush3.bf16.msra.mxu0 %v128_v2 }
   0x9   :  { %122 = vmatmul.mubr.msk.bf16.vlgmr.msra.gmra.mxu0 %vm45_vm1, %v129_v3 }
  0xc9   :  { %v83_v5 = vpop.f32.mrf.mxu0 }
  0xca   :  { %v84_v6 = vadd.f32 %v105_v4, %v83_v5 }
  0xcb   :  { %v123_v7 = vpop.f32.mrf.mxu0 }
  0xcc   :  { %v112_v8 = vpack.c.bf16 %v84_v6, %v84_v6 }
  0xcd   :  { %v86_v9 = vpop.f32.mrf.mxu0 }
  0xce   :  { %99 = vst.msk [vmem:[%s173_s3] sm:$0xf] %vm98_vm2, %v112_v8  ;;  %v87_v10 = vadd.f32 %v105_v4, %v86_v9 }
  0xcf   :  { %v124_v11 = vpop.f32.mrf.mxu0 }
  0xd0   :  { %v113_v12 = vpack.c.bf16 %v87_v10, %v87_v10 }
  0xd2   :  { %100 = vst.msk [vmem:[%s173_s3 + $0x4] sm:$0xf] %vm98_vm2, %v113_v12 }

// kernel: fwd.13
= control target key start
LH: loop header
LB: loop body
LE: loop exit
PB: predicated region body
PF: predicated region fallthrough
CT: control target
= control target key end

     0   :  { %v159_v0 = vmov 0.0   ;;  %vm160_vm0 = vmmov 0   ;;  %vm48_vm1 = vcmask 261120   ;;  %vm101_vm2 = vcmask 257024   ;;  %s162_s27 = smov 96   ;;  %s229_s1 = inlined_call_operand.vmem [shape: bf16[32,96], index: 1, kind: input, shape index: {}]   ;;  %s230_s0 = inlined_call_operand.vmem [shape: bf16[16,32], index: 0, kind: input, shape index: {}]   ;;  %s231_s2 = inlined_call_operand.vmem [shape: f32[1,96], index: 2, kind: input, shape index: {}]   ;;  %s232_s3 = inlined_call_operand.vmem [shape: bf16[16,32], index: 3, kind: output, shape index: {0}]   ;;  %s233_s5 = inlined_call_operand.vmem [shape: bf16[16,32], index: 5, kind: output, shape index: {2}]   ;;  %s234_s4 = inlined_call_operand.vmem [shape: bf16[16,32], index: 4, kind: output, shape index: {1}]  }
   0x1   :  { %144 = vmatprep.subr.bf16.mxu0 %v159_v0  ;;  %v156_v1 = vld [vmem:[%s229_s1 + $0x8] sm:$0xff]   ;;  %148 = vmatprep.mubr.msk.bf16.mxu0 %vm160_vm0, %v159_v0  ;;  %v157_v2 = vld [vmem:[%s229_s1] sm:$0xff]  }
   0x2   :  { %145 = vmatpush3.bf16.msra.mxu0 %v156_v1  ;;  %v158_v3 = vld [vmem:[%s230_s0] sm:$0xff]   ;;  %s161_s0 = smov 64  }
   0x3   :  { %146 = vmatprep.subr.bf16.mxu0 %v159_v0  ;;  %v132_v4 = vld [vmem:[%s231_s2] ss:$0 sm:$0xff] }
   0x6   :  { %147 = vmatpush3.bf16.msra.mxu0 %v157_v2 }
   0x9   :  { %149 = vmatmul.mubr.msk.bf16.vlgmr.msra.gmra.mxu0 %vm48_vm1, %v158_v3 }
  0xc9   :  { %v86_v5 = vpop.f32.mrf.mxu0 }
  0xca   :  { %v87_v6 = vadd.f32 %v132_v4, %v86_v5 }
  0xcb   :  { %v150_v7 = vpop.f32.mrf.mxu0 }
  0xcc   :  { %v139_v8 = vpack.c.bf16 %v87_v6, %v87_v6 }
  0xcd   :  { %v89_v9 = vpop.f32.mrf.mxu0 }
  0xce   :  { %102 = vst.msk [vmem:[%s232_s3] sm:$0xf] %vm101_vm2, %v139_v8  ;;  %v90_v10 = vadd.f32 %v132_v4, %v89_v9  ;;  %112 = vrot.lane.b32.xlu1 %v139_v8, %s161_s0  ;;  %104 = vrot.lane.b32.xlu0 %v139_v8, %s162_s27 }
  0xcf   :  { %v151_v11 = vpop.f32.mrf.mxu0 }
  0xd0   :  { %v140_v12 = vpack.c.bf16 %v90_v10, %v90_v10 }
  0xd2   :  { %103 = vst.msk [vmem:[%s232_s3 + $0x4] sm:$0xf] %vm101_vm2, %v140_v12  ;;  %114 = vrot.lane.b32.xlu1 %v140_v12, %s161_s0  ;;  %106 = vrot.lane.b32.xlu0 %v140_v12, %s162_s27 }
 0x140   :  { %v113_v13 = vpop.permute.xlu1 %112  ;;  %v105_v14 = vpop.permute.xlu0 %104 }
 0x141   :  { %118 = vst.msk [vmem:[%s233_s5] sm:$0xf] %vm101_vm2, %v113_v13  ;;  %110 = vst.msk [vmem:[%s234_s4] sm:$0xf] %vm101_vm2, %v105_v14 }
 0x144   :  { %v115_v15 = vpop.permute.xlu1 %114  ;;  %v107_v16 = vpop.permute.xlu0 %106 }
 0x145   :  { %119 = vst.msk [vmem:[%s233_s5 + $0x4] sm:$0xf] %vm101_vm2, %v115_v15  ;;  %111 = vst.msk [vmem:[%s234_s4 + $0x4] sm:$0xf] %vm101_vm2, %v107_v16 }

// kernel: fwd.16
= control target key start
LH: loop header
LB: loop body
LE: loop exit
PB: predicated region body
PF: predicated region fallthrough
CT: control target
= control target key end

     0   :  { %vm51_vm0 = vcmask 261120   ;;  %vm122_vm1 = vcmask 254976   ;;  %vm119_vm2 = vcmask 257024   ;;  %s239_s1 = inlined_call_operand.vmem [shape: bf16[32,64], index: 1, kind: input, shape index: {}]   ;;  %s240_s0 = inlined_call_operand.vmem [shape: bf16[20,32], index: 0, kind: input, shape index: {}]   ;;  %s241_s2 = inlined_call_operand.vmem [shape: f32[1,64], index: 2, kind: input, shape index: {}]   ;;  %s242_s3 = inlined_call_operand.vmem [shape: bf16[20,32], index: 3, kind: output, shape index: {0}]   ;;  %s243_s4 = inlined_call_operand.vmem [shape: bf16[20,32], index: 4, kind: output, shape index: {1}]  }
   0x1   :  { %v170_v0 = vld [vmem:[%s239_s1 + $0x8] sm:$0xff]   ;;  %v171_v1 = vld [vmem:[%s239_s1] sm:$0xff]   ;;  %s174_s1 = smov 96  }
   0x2   :  { %161 = vmatprep.subr.bf16.mxu0 %v170_v0  ;;  %v172_v2 = vld [vmem:[%s240_s0] sm:$0xff]   ;;  %v173_v3 = vld [vmem:[%s240_s0 + $0x8] ss:$0 sps:$4 sm:$0x33]  }
   0x3   :  { %162 = vmatpush3.bf16.msra.mxu0 %v170_v0  ;;  %165 = vmatprep.mubr.msk.bf16.mxu0 %vm51_vm0, %v172_v2  ;;  %v144_v4 = vld [vmem:[%s241_s2] ss:$0 sm:$0xff] }
   0x4   :  { %163 = vmatprep.subr.bf16.mxu0 %v171_v1 }
   0x7   :  { %164 = vmatpush3.bf16.msra.mxu0 %v171_v1 }
   0xa   :  { %166 = vmatmul.mubr.msk.bf16.vlgmr.msra.gmra.mxu0 %vm51_vm0, %v173_v3 }
  0xca   :  { %v167_v5 = vpop.f32.mrf.mxu0 }
  0xcb   :  { %v101_v6 = vadd.f32 %v167_v5, %v144_v4 }
  0xcc   :  { %v92_v7 = vpop.f32.mrf.mxu0 }
  0xcd   :  { %v156_v8 = vpack.c.bf16 %v101_v6, %v101_v6  ;;  %v93_v9 = vadd.f32 %v144_v4, %v92_v7 }
  0xce   :  { %v168_v10 = vpop.f32.mrf.mxu0 }
  0xcf   :  { %v154_v11 = vpack.c.bf16 %v93_v9, %v93_v9  ;;  %128 = vrot.lane.b32.xlu1 %v156_v8, %s174_s1  ;;  %123 = vst.msk [vmem:[%s242_s3 + $0x8] sm:$0x3] %vm122_vm1, %v156_v8 }
  0xd0   :  { %v95_v12 = vpop.f32.mrf.mxu0 }
  0xd1   :  { %120 = vst.msk [vmem:[%s242_s3] sm:$0xf] %vm119_vm2, %v154_v11  ;;  %v96_v13 = vadd.f32 %v144_v4, %v95_v12  ;;  %124 = vrot.lane.b32.xlu0 %v154_v11, %s174_s1 }
  0xd3   :  { %v155_v14 = vpack.c.bf16 %v96_v13, %v96_v13 }
  0xd5   :  { %121 = vst.msk [vmem:[%s242_s3 + $0x4] sm:$0xf] %vm119_vm2, %v155_v14  ;;  %126 = vrot.lane.b32.xlu0 %v155_v14, %s174_s1 }
 0x141   :  { %v129_v15 = vpop.permute.xlu1 %128 }
 0x142   :  { %135 = vst.msk [vmem:[%s243_s4 + $0x8] sm:$0x3] %vm122_vm1, %v129_v15 }
 0x143   :  { %v125_v16 = vpop.permute.xlu0 %124 }
 0x144   :  { %133 = vst.msk [vmem:[%s243_s4] sm:$0xf] %vm119_vm2, %v125_v16 }
 0x147   :  { %v127_v17 = vpop.permute.xlu0 %126 }
 0x148   :  { %134 = vst.msk [vmem:[%s243_s4 + $0x4] sm:$0xf] %vm119_vm2, %v127_v17 }

// kernel: fwd.14
= control target key start
LH: loop header
LB: loop body
LE: loop exit
PB: predicated region body
PF: predicated region fallthrough
CT: control target
= control target key end

     0   :  { %s1327_s27 = smov 0   ;;  %s1329_s28 = smov 0   ;;  %s1467_s0 = inlined_call_operand.vmem [shape: bf16[2,8,32], index: 0, kind: input, shape index: {}]   ;;  %s1468_s1 = inlined_call_operand.vmem [shape: bf16[2,8,32], index: 1, kind: input, shape index: {}]   ;;  %s1469_s2 = inlined_call_operand.vmem [shape: bf16[2,8,32], index: 2, kind: input, shape index: {}]   ;;  %s1470_s3 = inlined_call_operand.vmem [shape: bf16[2,8,32], index: 3, kind: input, shape index: {}]   ;;  %s1471_s4 = inlined_call_operand.vmem [shape: bf16[32,32], index: 4, kind: input, shape index: {}]   ;;  %s1472_s5 = inlined_call_operand.vmem [shape: f32[1,32], index: 5, kind: input, shape index: {}]   ;;  %s1473_s6 = inlined_call_operand.vmem [shape: f32[1,32], index: 6, kind: input, shape index: {}]   ;;  %s1474_s7 = inlined_call_operand.vmem [shape: f32[1,32], index: 7, kind: input, shape index: {}]   ;;  %s1475_s8 = inlined_call_operand.vmem [shape: bf16[2,8,32], index: 8, kind: output, shape index: {}]  }
   0x1   :  { %s1331_s29 = smov 0  }
   0x2 LB: > { %s30_s30 = sadd.s32 1, %s1267_s28  ;;  %p1093_p0 = scmp.ge.s32.totalorder %s1271_s29, 1  ;;  %s1271_s29 = sphi %s1331_s29, %s18_s29   ;;  %s1267_s28 = sphi %s1329_s28, %s1477_s28   ;;  %s1263_s27 = sphi %s1327_s27, %s1476_s27  }
   0x3   : > { %p32_p1 = scmp.ge.s32.totalorder %s30_s30, 2  ;;  %p312_p2 = scmp.lt.s32.totalorder %s1271_s29, 3 }
   0x5   : > { %s1479_s30 = smov (%p32_p1, %s30_s30), 0  ;;  %p313_p3 = pnand %p1093_p0, %p312_p2 }
   0x6   : > { %p365_p4 = scmp.lt.s32.totalorder (!%p313_p3), %s1263_s27, 1  ;;  %s1276_s16 = smov (!%p313_p3), 120  }
   0x7   : > { %316 = sbr.rel (%p313_p3) target bundleno = 1929 (0x789), region = 52  ;;  %s1277_s17 = smov (!%p313_p3), 112  }
   0x8   : > { %s1278_s18 = smov (!%p313_p3), 104   ;;  %s1279_s22 = smov (!%p313_p3), 8  }
   0x9   : > { %s1280_s23 = smov (!%p313_p3), 16   ;;  %s1281_s10 = smov (!%p313_p3), 24  }
   0xc   : > { %v1273_v0 = vmov 0.0   ;;  %vm1274_vm0 = vmmov 0   ;;  %s1481_s27 = smov (!%p365_p4, %s1263_s27), 1  ;;  %vm407_vm1 = vcmask 64512   ;;  %v399_v4 = vlaneseq }
   0xd   : > { %1137 = vmatprep.subr.bf16.mxu0 %v1273_v0  ;;  %1139 = vmatprep.mubr.msk.bf16.mxu0 %vm1274_vm0, %v1273_v0  ;;  %s1351_s9 = sshll.u32 %s1481_s27, 2  ;;  %v1275_v7 = vmov -1e+30   ;;  %vm469_vm3 = vcmask 1043456   ;;  %vm637_vm4 = vcmask 130112   ;;  %vm753_vm5 = vcmask 195712  }
   0xe   : > { %1143 = vmatprep.subr.bf16.mxu1 %v1273_v0  ;;  %1145 = vmatprep.mubr.msk.bf16.mxu1 %vm1274_vm0, %v1273_v0  ;;  %s375_s12 = scalar_lea.vmem %s1468_s1, %s1351_s9  ;;  %s371_s15 = scalar_lea.vmem %s1467_s0, %s1351_s9  ;;  %v400_v5 = vshrl.u32 %v399_v4, 7  ;;  %v404_v6 = vand.u32 127, %v399_v4  ;;  %vm869_vm6 = vcmask 261312   ;;  %vm896_vm7 = vcmask 261120  }
   0xf   : > { %v396_v1 = vld [vmem:[%s375_s12] sm:$0xf]  ;;  %s379_s21 = scalar_lea.vmem %s1469_s2, %s1351_s9  ;;  %s386_s13 = scalar_lea.vmem %s1470_s3, %s1351_s9  ;;  %vm974_vm8 = vcmask 257024  }
  0x10   : > { %v412_v2 = vsel %vm407_vm1, %v396_v1, 0  ;;  %v395_v3 = vld [vmem:[%s371_s15] sm:$0xf]  ;;  %vm405_vm2 = vcmp.ge.s32.totalorder %v400_v5, %v404_v6  ;;  %v1102_v15 = vcombine.low %v396_v1, %v396_v1 }
  0x11   : > { %1138 = vmatpush3.bf16.xpose.msra.mxu0 %v412_v2  ;;  %v1366_v8 = vsel %vm405_vm2, 0.0, %v1275_v7  ;;  %v1101_v16 = vcombine.low %v395_v3, %v395_v3  ;;  %v1380_v22 = vld [vmem:[%s379_s21] sm:$0xf] }
  0x12   : > { %1155 = vmatprep.subr.bf16.mxu0 %v1273_v0  ;;  %522 = vrot.lane.b32.xlu1 %v1102_v15, %s1276_s16  ;;  %v471_v23 = vsel %vm469_vm3, %v1380_v22, 0  ;;  %v1104_v6 = vcombine.low %v1380_v22, %v1380_v22 }
  0x13   : > { %1144 = vmatpush3.bf16.msra.mxu1 %v471_v23 }
  0x14   : > { %1149 = vmatprep.subr.bf16.mxu1 %v1273_v0 }
  0x16   : > { %517 = vrot.lane.b32.xlu1 %v1101_v16, %s1276_s16 }
  0x18   : > { %1140 = vmatmul.mubr.msk.bf16.vlgmr.msra.gmra.mxu0 %vm407_vm1, %v395_v3 }
  0x19   : > { %1157 = vmatprep.mubr.msk.bf16.mxu0 %vm1274_vm0, %v1273_v0 }
  0x1a   : > { %639 = vrot.lane.b32.xlu1 %v1101_v16, %s1277_s17 }
  0x1e   : > { %757 = vrot.lane.b32.xlu1 %v1102_v15, %s1278_s18 }
  0x22   : > { %755 = vrot.lane.b32.xlu1 %v1101_v16, %s1278_s18 }
  0x84   : > { %v523_v26 = vpop.permute.xlu1 %522 }
  0x85   : > { %v528_v28 = vsel %vm407_vm1, %v523_v26, 0 }
  0x88   : > { %v518_v30 = vpop.permute.xlu1 %517 }
  0x8c   : > { %v640_v32 = vpop.permute.xlu1 %639 }
  0x90   : > { %v758_v34 = vpop.permute.xlu1 %757 }
  0x91   : > { %v763_v35 = vsel %vm407_vm1, %v758_v34, 0 }
  0x94   : > { %v756_v36 = vpop.permute.xlu1 %755 }
  0xd8   : > { %v448_v9 = vpop.f32.mrf.mxu0 }
  0xd9   : > { %v449_v10 = vadd.f32 %v448_v9, %v1366_v8 }
  0xda   : > { %v1141_v11 = vpop.f32.mrf.mxu0 }
  0xdb   : > { %v454_v12 = vsel %vm407_vm1, %v449_v10, -inf }
  0xdc   : > { %455 = vmax.xlane.f32.xlu0 %v454_v12  ;;  %v451_v13 = vpop.f32.mrf.mxu0 }
  0xde   : > { %v1142_v14 = vpop.f32.mrf.mxu0 }
 0x165   : > { %v456_v17 = vpop.xlane.xlu0 %455 }
 0x166   : > { %v457_v18 = vsub.f32 %v449_v10, %v456_v17 }
 0x168   : > { %v458_v19 = vmul.f32 1.442695, %v457_v18 }
 0x16a   : > { %1231 = vpow2.f32 %v458_v19 }
 0x177   : > { %v1232_v20 = vpop.eup %1231 }
 0x178   : > { %v460_v21 = vsel %vm407_vm1, %v1232_v20, 0.0 }
 0x179   : > { %461 = vadd.xlane.f32.xlu0 %v460_v21 }
 0x18f   : > { %641 = vrot.lane.b32.xlu0 %v1102_v15, %s1277_s17 }
 0x202   : > { %v462_v24 = vpop.xlane.xlu0 %461 }
 0x203   : > { %1233 = vrcp.f32 %v462_v24 }
 0x206   : > { %v642_v31 = vpop.permute.xlu0 %641 }
 0x207   : > { %v647_v33 = vsel %vm407_vm1, %v642_v31, 0 }
 0x210   : > { %v1234_v25 = vpop.eup %1233 }
 0x211   : > { %v464_v27 = vmul.f32 %v1234_v25, %v1232_v20 }
 0x213   : > { %v465_v29 = vpack.c.bf16 %v464_v27, %v464_v27 }
 0x215   : > { %1146 = vmatmul.mubr.msk.bf16.vlgmr.msra.gmra.mxu1 %vm407_vm1, %v465_v29 }
 0x216   : > { %1150 = vmatpush3.bf16.xpose.msra.mxu1 %v528_v28  ;;  %1151 = vmatprep.mubr.msk.bf16.mxu1 %vm1274_vm0, %v1273_v0 }
 0x217   : > { %1161 = vmatprep.subr.bf16.mxu1 %v1273_v0 }
 0x21d   : > { %1152 = vmatmul.mubr.msk.bf16.vlgmr.msra.gmra.mxu1 %vm407_vm1, %v518_v30 }
 0x21e   : > { %1162 = vmatpush3.bf16.xpose.msra.mxu1 %v647_v33  ;;  %1163 = vmatprep.mubr.msk.bf16.mxu1 %vm1274_vm0, %v1273_v0 }
 0x21f   : > { %1173 = vmatprep.subr.bf16.mxu1 %v1273_v0 }
 0x225   : > { %1164 = vmatmul.mubr.msk.bf16.vlgmr.msra.gmra.mxu1 %vm407_vm1, %v640_v32 }
 0x226   : > { %1174 = vmatpush3.bf16.xpose.msra.mxu1 %v763_v35  ;;  %1175 = vmatprep.mubr.msk.bf16.mxu1 %vm1274_vm0, %v1273_v0 }
 0x227   : > { %1185 = vmatprep.subr.bf16.mxu1 %v1273_v0 }
 0x22d   : > { %1176 = vmatmul.mubr.msk.bf16.vlgmr.msra.gmra.mxu1 %vm407_vm1, %v756_v36 }
 0x22e   : > { %1189 = vmatprep.mubr.msk.bf16.mxu1 %vm1274_vm0, %v1273_v0 }
 0x2d5   : > { %v507_v37 = vpop.f32.mrf.mxu1 }
 0x2d6   : > { %513 = vst.msk [vmem:[#allocation2] sm:$0xff] %vm407_vm1, %v507_v37 }
 0x2d7   : > { %v1147_v38 = vpop.f32.mrf.mxu1 }
 0x2d8   : > { %v1229_v38 = vld [vmem:[%s1471_s4 + $0x8] sm:$0xff]  }
 0x2d9   : > { %v510_v39 = vpop.f32.mrf.mxu1  ;;  %1186 = vmatpush3.bf16.msra.mxu1 %v1229_v38 }
 0x2da   : > { %v1230_v39 = vld [vmem:[%s1471_s4] sm:$0xff]   ;;  %1187 = vmatprep.subr.bf16.mxu1 %v1273_v0 }
 0x2db   : > { %v1148_v40 = vpop.f32.mrf.mxu1 }
 0x2dd   : > { %v564_v41 = vpop.f32.mrf.mxu1  ;;  %1188 = vmatpush3.bf16.msra.mxu1 %v1230_v39 }
 0x2de   : > { %v565_v42 = vadd.f32 %v564_v41, %v1366_v8 }
 0x2df   : > { %v1153_v43 = vpop.f32.mrf.mxu1 }
 0x2e0   : > { %v570_v44 = vsel %vm407_vm1, %v565_v42, -inf }
 0x2e1   : > { %571 = vmax.xlane.f32.xlu1 %v570_v44  ;;  %v567_v45 = vpop.f32.mrf.mxu1 }
 0x2e3   : > { %v1154_v46 = vpop.f32.mrf.mxu1 }
 0x2e5   : > { %v683_v47 = vpop.f32.mrf.mxu1 }
 0x2e6   : > { %v684_v48 = vadd.f32 %v683_v47, %v1366_v8 }
 0x2e7   : > { %v1165_v49 = vpop.f32.mrf.mxu1 }
 0x2e8   : > { %v689_v50 = vsel %vm407_vm1, %v684_v48, -inf  ;;  %v1110_v49 = vld [vmem:[%s1472_s5] ss:$0 sm:$0xff] }
 0x2e9   : > { %690 = vmax.xlane.f32.xlu0 %v689_v50  ;;  %v686_v51 = vpop.f32.mrf.mxu1 }
 0x2eb   : > { %v1166_v52 = vpop.f32.mrf.mxu1 }
 0x2ed   : > { %v799_v53 = vpop.f32.mrf.mxu1 }
 0x2ee   : > { %v800_v54 = vadd.f32 %v799_v53, %v1366_v8 }
 0x2ef   : > { %v1177_v55 = vpop.f32.mrf.mxu1 }
 0x2f0   : > { %v805_v56 = vsel %vm407_vm1, %v800_v54, -inf }
 0x2f1   : > { %806 = vmax.xlane.f32.xlu1 %v805_v56  ;;  %v802_v57 = vpop.f32.mrf.mxu1 }
 0x2f3   : > { %v1178_v58 = vpop.f32.mrf.mxu1 }
 0x36a   : > { %v572_v59 = vpop.xlane.xlu1 %571 }
 0x36b   : > { %v573_v60 = vsub.f32 %v565_v42, %v572_v59 }
 0x36d   : > { %v574_v61 = vmul.f32 1.442695, %v573_v60 }
 0x36f   : > { %1235 = vpow2.f32 %v574_v61 }
 0x372   : > { %v691_v62 = vpop.xlane.xlu0 %690 }
 0x373   : > { %v692_v63 = vsub.f32 %v684_v48, %v691_v62  ;;  %v940_v48 = vld [vmem:[%s386_s13] sm:$0xf] }
 0x374   : > { %v941_v50 = vunpack.c.l.bf16 %v940_v48 }
 0x375   : > { %v693_v1 = vmul.f32 1.442695, %v692_v63 }
 0x377   : > { %1237 = vpow2.f32 %v693_v1 }
 0x37a   : > { %v807_v7 = vpop.xlane.xlu1 %806 }
 0x37b   : > { %v808_v8 = vsub.f32 %v800_v54, %v807_v7 }
 0x37c   : > { %v1236_v2 = vpop.eup %1235 }
 0x37d   : > { %v576_v3 = vsel %vm407_vm1, %v1236_v2, 0.0  ;;  %v809_v9 = vmul.f32 1.442695, %v808_v8 }
 0x37e   : > { %577 = vadd.xlane.f32.xlu1 %v576_v3 }
 0x37f   : > { %1239 = vpow2.f32 %v809_v9 }
 0x384   : > { %v1238_v4 = vpop.eup %1237 }
 0x385   : > { %v695_v5 = vsel %vm407_vm1, %v1238_v4, 0.0 }
 0x386   : > { %696 = vadd.xlane.f32.xlu0 %v695_v5 }
 0x38c   : > { %v1240_v10 = vpop.eup %1239 }
 0x38d   : > { %v811_v11 = vsel %vm407_vm1, %v1240_v10, 0.0 }
 0x38f   : > { %701 = vrot.lane.b32.xlu1 %v1104_v6, %s1277_s17 }
 0x39c   : > { %585 = vrot.lane.b32.xlu0 %v1104_v6, %s1276_s16 }
 0x3b3   : > { %812 = vadd.xlane.f32.xlu1 %v811_v11 }
 0x3c4   : > { %817 = vrot.lane.b32.xlu1 %v1104_v6, %s1278_s18  ;;  %v1115_v6 = vld [vmem:[%s1474_s7] ss:$0 sm:$0xff] }
 0x407   : > { %v578_v12 = vpop.xlane.xlu1 %577 }
 0x408   : > { %1241 = vrcp.f32 %v578_v12 }
 0x40b   : > { %v702_v18 = vpop.permute.xlu1 %701 }
 0x40c   : > { %v707_v20 = vsel %vm469_vm3, %v702_v18, 0 }
 0x40f   : > { %v697_v13 = vpop.xlane.xlu0 %696 }
 0x410   : > { %1243 = vrcp.f32 %v697_v13 }
 0x413   : > { %v586_v14 = vpop.permute.xlu0 %585 }
 0x414   : > { %v591_v15 = vsel %vm469_vm3, %v586_v14, 0 }
 0x415   : > { %v1242_v16 = vpop.eup %1241  ;;  %1156 = vmatpush3.bf16.msra.mxu0 %v591_v15 }
 0x416   : > { %1167 = vmatprep.subr.bf16.mxu0 %v1273_v0  ;;  %v580_v17 = vmul.f32 %v1242_v16, %v1236_v2 }
 0x418   : > { %v581_v19 = vpack.c.bf16 %v580_v17, %v580_v17 }
 0x41a   : > { %1158 = vmatmul.mubr.msk.bf16.vlgmr.msra.gmra.mxu0 %vm407_vm1, %v581_v19 }
 0x41b   : > { %1168 = vmatpush3.bf16.msra.mxu0 %v707_v20  ;;  %1169 = vmatprep.mubr.msk.bf16.mxu0 %vm1274_vm0, %v1273_v0 }
 0x41c   : > { %1179 = vmatprep.subr.bf16.mxu0 %v1273_v0 }
 0x41d   : > { %v1244_v21 = vpop.eup %1243 }
 0x41e   : > { %v699_v22 = vmul.f32 %v1244_v21, %v1238_v4  ;;  %v1114_v4 = vld [vmem:[%s1473_s6] ss:$0 sm:$0xff] }
 0x420   : > { %v700_v23 = vpack.c.bf16 %v699_v22, %v699_v22 }
 0x422   : > { %1170 = vmatmul.mubr.msk.bf16.vlgmr.msra.gmra.mxu0 %vm407_vm1, %v700_v23 }
 0x423   : > { %1181 = vmatprep.mubr.msk.bf16.mxu0 %vm1274_vm0, %v1273_v0 }
 0x43c   : > { %v813_v24 = vpop.xlane.xlu1 %812 }
 0x43d   : > { %1245 = vrcp.f32 %v813_v24 }
 0x440   : > { %v818_v25 = vpop.permute.xlu1 %817 }
 0x441   : > { %v823_v26 = vsel %vm469_vm3, %v818_v25, 0 }
 0x442   : > { %1180 = vmatpush3.bf16.msra.mxu0 %v823_v26 }
 0x44a   : > { %v1246_v27 = vpop.eup %1245 }
 0x44b   : > { %v815_v28 = vmul.f32 %v1246_v27, %v1240_v10 }
 0x44d   : > { %v816_v29 = vpack.c.bf16 %v815_v28, %v815_v28 }
 0x44f   : > { %1182 = vmatmul.mubr.msk.bf16.vlgmr.msra.gmra.mxu0 %vm407_vm1, %v816_v29 }
 0x4da   : > { %v627_v30 = vpop.f32.mrf.mxu0 }
 0x4db   : > { %634 = vrot.lane.b32.xlu0 %v627_v30, %s1279_s22  ;;  %s393_s22 = scalar_lea.vmem %s1475_s8, %s1351_s9 }
 0x4dc   : > { %v1159_v31 = vpop.f32.mrf.mxu0 }
 0x4de   : > { %v630_v32 = vpop.f32.mrf.mxu0 }
 0x4e0   : > { %v1160_v33 = vpop.f32.mrf.mxu0 }
 0x4e2   : > { %v743_v34 = vpop.f32.mrf.mxu0 }
 0x4e3   : > { %750 = vrot.lane.b32.xlu1 %v743_v34, %s1280_s23 }
 0x4e4   : > { %v1171_v35 = vpop.f32.mrf.mxu0 }
 0x4e6   : > { %v746_v36 = vpop.f32.mrf.mxu0 }
 0x4e8   : > { %v1172_v37 = vpop.f32.mrf.mxu0 }
 0x50f   : > { %v859_v40 = vpop.f32.mrf.mxu0 }
 0x510   : > { %866 = vrot.lane.b32.xlu0 %v859_v40, %s1281_s10 }
 0x511   : > { %v1183_v41 = vpop.f32.mrf.mxu0 }
 0x513   : > { %v862_v42 = vpop.f32.mrf.mxu0 }
 0x515   : > { %v1184_v43 = vpop.f32.mrf.mxu0 }
 0x54d   : > { %v635_v44 = vpop.permute.xlu0 %634 }
 0x54e   : > { %638 = vst.msk [vmem:[#allocation2] sm:$0xff] %vm637_vm4, %v635_v44 }
 0x555   : > { %v751_v45 = vpop.permute.xlu1 %750 }
 0x556   : > { %754 = vst.msk [vmem:[#allocation2] sm:$0xff] %vm753_vm5, %v751_v45 }
 0x582   : > { %v867_v46 = vpop.permute.xlu0 %866 }
 0x583   : > { %870 = vst.msk [vmem:[#allocation2] sm:$0xff] %vm869_vm6, %v867_v46 }
 0x58a   : > { %v871_v47 = vld [vmem:[#allocation2] sm:$0xff] }
 0x58b   : > { %v872_v0 = vpack.c.bf16 %v871_v47, %v871_v47 }
 0x58d   : > { %1190 = vmatmul.mubr.msk.bf16.vlgmr.msra.gmra.mxu1 %vm896_vm7, %v872_v0 }
 0x64d   : > { %v934_v51 = vpop.f32.mrf.mxu1 }
 0x64e   : > { %v935_v52 = vadd.f32 %v1110_v49, %v934_v51 }
 0x64f   : > { %v1191_v53 = vpop.f32.mrf.mxu1 }
 0x650   : > { %v942_v54 = vadd.f32 %v941_v50, %v935_v52 }
 0x651   : > { %v937_v55 = vpop.f32.mrf.mxu1 }
 0x652   : > { %v943_v56 = vsel %vm896_vm7, %v942_v54, 0.0 }
 0x653   : > { %944 = vadd.xlane.f32.xlu1 %v943_v56  ;;  %v1192_v57 = vpop.f32.mrf.mxu1 }
 0x6dc   : > { %v945_v58 = vpop.xlane.xlu1 %944 }
 0x6dd   : > { %v947_v59 = vmul.f32 0.03125, %v945_v58 }
 0x6df   : > { %v948_v60 = vsub.f32 %v942_v54, %v947_v59 }
 0x6e1   : > { %v949_v61 = vmul.f32 %v948_v60, %v948_v60 }
 0x6e3   : > { %v950_v62 = vsel %vm896_vm7, %v949_v61, 0.0 }
 0x6e4   : > { %951 = vadd.xlane.f32.xlu0 %v950_v62 }
 0x76d   : > { %v952_v63 = vpop.xlane.xlu0 %951 }
 0x76e   : > { %v953_v1 = vmul.f32 0.03125, %v952_v63 }
 0x770   : > { %v954_v2 = vadd.f32 1e-05, %v953_v1 }
 0x772   : > { %1247 = vrsqrt.f32 %v954_v2 }
 0x77f   : > { %v1248_v3 = vpop.eup %1247 }
 0x780   : > { %v956_v5 = vmul.f32 %v1248_v3, %v948_v60 }
 0x782   : > { %v964_v7 = vmul.f32 %v1114_v4, %v956_v5 }
 0x784   : > { %v972_v8 = vadd.f32 %v1115_v6, %v964_v7 }
 0x786   : > { %v973_v9 = vpack.c.bf16 %v972_v8, %v972_v8 }
 0x788   : > { %975 = vst.msk [vmem:[%s393_s22] sm:$0xf] %vm974_vm8, %v973_v9 }
 0x789 PF: > { %s18_s29 = sadd.s32 1, %s1271_s29   ;;  %s1476_s27 = smov %s1267_s28 }
 0x78a   : > { %p15_p5 = scmp.ge.s32.totalorder %s18_s29, 4   ;;  %s1477_s28 = smov %s1479_s30 }
 0x78c   :  { %17 = sbr.rel (!%p15_p5) target bundleno = 2 (0x2), region = 91 }

// kernel: fwd.18
= control target key start
LH: loop header
LB: loop body
LE: loop exit
PB: predicated region body
PF: predicated region fallthrough
CT: control target
= control target key end

     0   :  { %v312_v0 = vmov 0.0   ;;  %vm313_vm0 = vmmov 0   ;;  %vm57_vm1 = vcmask 261120   ;;  %vm144_vm2 = vcmask 523264   ;;  %s398_s1 = inlined_call_operand.vmem [shape: bf16[32,64], index: 1, kind: input, shape index: {}]   ;;  %s399_s0 = inlined_call_operand.vmem [shape: bf16[16,32], index: 0, kind: input, shape index: {}]   ;;  %s400_s3 = inlined_call_operand.vmem [shape: bf16[64,32], index: 3, kind: input, shape index: {}]   ;;  %s401_s2 = inlined_call_operand.vmem [shape: f32[1,64], index: 2, kind: input, shape index: {}]   ;;  %s402_s4 = inlined_call_operand.vmem [shape: f32[1,32], index: 4, kind: input, shape index: {}]   ;;  %s403_s5 = inlined_call_operand.vmem [shape: f32[1,32], index: 5, kind: input, shape index: {}]   ;;  %s404_s6 = inlined_call_operand.vmem [shape: f32[1,32], index: 6, kind: input, shape index: {}]   ;;  %s405_s7 = inlined_call_operand.vmem [shape: bf16[16,32], index: 7, kind: output, shape index: {}]  }
   0x1   :  { %278 = vmatprep.subr.bf16.mxu0 %v312_v0  ;;  %v300_v1 = vld [vmem:[%s398_s1 + $0x8] sm:$0xff]   ;;  %282 = vmatprep.mubr.msk.bf16.mxu0 %vm313_vm0, %v312_v0  ;;  %v301_v2 = vld [vmem:[%s398_s1] sm:$0xff]   ;;  %v303_v4 = vld [vmem:[%s400_s3 + $0x18] sm:$0xff]   ;;  %vm246_vm3 = vcmask 257024  }
   0x2   :  { %286 = vmatprep.subr.bf16.mxu1 %v312_v0  ;;  %294 = vmatprep.mubr.msk.bf16.mxu1 %vm313_vm0, %v312_v0  ;;  %v27_v3 = vld [vmem:[%s399_s0] sm:$0xff]   ;;  %v304_v5 = vld [vmem:[%s400_s3 + $0x10] sm:$0xff]   ;;  %v305_v6 = vld [vmem:[%s400_s3 + $0x8] sm:$0xff]  }
   0x3   :  { %279 = vmatpush3.bf16.msra.mxu0 %v300_v1  ;;  %287 = vmatpush3.bf16.msra.mxu1 %v303_v4  ;;  %v306_v7 = vld [vmem:[%s400_s3] sm:$0xff]   ;;  %v189_v19 = vunpack.c.l.bf16 %v27_v3  ;;  %v190_v24 = vunpack.c.h.bf16 %v27_v3 }
   0x4   :  { %280 = vmatprep.subr.bf16.mxu0 %v312_v0  ;;  %288 = vmatprep.subr.bf16.mxu1 %v312_v0  ;;  %v253_v8 = vld [vmem:[%s401_s2] ss:$0 sm:$0xff] }
   0x5   :  { %v258_v18 = vld [vmem:[%s402_s4] ss:$0 sm:$0xff] }
   0x6   :  { %v264_v48 = vld [vmem:[%s403_s5] ss:$0 sm:$0xff] }
   0x7   :  { %281 = vmatpush3.bf16.msra.mxu0 %v301_v2  ;;  %289 = vmatpush3.bf16.msra.mxu1 %v304_v5  ;;  %v265_v50 = vld [vmem:[%s404_s6] ss:$0 sm:$0xff] }
   0x8   :  { %290 = vmatprep.subr.bf16.mxu1 %v312_v0 }
   0xa   :  { %283 = vmatmul.mubr.msk.bf16.vlgmr.msra.gmra.mxu0 %vm57_vm1, %v27_v3 }
   0xb   :  { %291 = vmatpush3.bf16.msra.mxu1 %v305_v6 }
   0xc   :  { %292 = vmatprep.subr.bf16.mxu1 %v312_v0 }
   0xf   :  { %293 = vmatpush3.bf16.msra.mxu1 %v306_v7 }
  0xca   :  { %v95_v9 = vpop.f32.mrf.mxu0 }
  0xcb   :  { %v96_v11 = vadd.f32 %v253_v8, %v95_v9 }
  0xcc   :  { %v284_v10 = vpop.f32.mrf.mxu0 }
  0xcd   :  { %v102_v15 = vmax.f32 %v96_v11, 0.0 }
  0xce   :  { %v98_v12 = vpop.f32.mrf.mxu0 }
  0xcf   :  { %v99_v13 = vadd.f32 %v253_v8, %v98_v12 }
  0xd0   :  { %v285_v14 = vpop.f32.mrf.mxu0 }
  0xd1   :  { %v103_v16 = vmax.f32 %v99_v13, 0.0 }
  0xd3   :  { %v104_v17 = vpack.c.bf16 %v103_v16, %v102_v15 }
  0xd5   :  { %295 = vmatmul.mubr.msk.bf16.vlgmr.msra.gmra.mxu1 %vm144_vm2, %v104_v17 }
 0x195   :  { %v182_v20 = vpop.f32.mrf.mxu1 }
 0x196   :  { %v183_v21 = vadd.f32 %v258_v18, %v182_v20 }
 0x197   :  { %v296_v22 = vpop.f32.mrf.mxu1 }
 0x198   :  { %v191_v23 = vadd.f32 %v189_v19, %v183_v21 }
 0x199   :  { %v185_v25 = vpop.f32.mrf.mxu1 }
 0x19a   :  { %v186_v26 = vadd.f32 %v258_v18, %v185_v25  ;;  %v193_v27 = vsel %vm57_vm1, %v191_v23, 0.0 }
 0x19b   :  { %194 = vadd.xlane.f32.xlu0 %v193_v27  ;;  %v297_v28 = vpop.f32.mrf.mxu1 }
 0x19c   :  { %v192_v29 = vadd.f32 %v190_v24, %v186_v26 }
 0x19e   :  { %v196_v30 = vsel %vm57_vm1, %v192_v29, 0.0 }
 0x19f   :  { %197 = vadd.xlane.f32.xlu0 %v196_v30 }
 0x224   :  { %v195_v31 = vpop.xlane.xlu0 %194 }
 0x225   :  { %v200_v32 = vmul.f32 0.03125, %v195_v31 }
 0x227   :  { %v202_v33 = vsub.f32 %v191_v23, %v200_v32 }
 0x228   :  { %v198_v34 = vpop.xlane.xlu0 %197 }
 0x229   :  { %v201_v35 = vmul.f32 0.03125, %v198_v34  ;;  %v204_v36 = vmul.f32 %v202_v33, %v202_v33 }
 0x22b   :  { %v203_v37 = vsub.f32 %v192_v29, %v201_v35  ;;  %v206_v38 = vsel %vm57_vm1, %v204_v36, 0.0 }
 0x22c   :  { %207 = vadd.xlane.f32.xlu1 %v206_v38 }
 0x22d   :  { %v205_v39 = vmul.f32 %v203_v37, %v203_v37 }
 0x22f   :  { %v209_v40 = vsel %vm57_vm1, %v205_v39, 0.0 }
 0x230   :  { %210 = vadd.xlane.f32.xlu1 %v209_v40 }
 0x2b5   :  { %v208_v41 = vpop.xlane.xlu1 %207 }
 0x2b6   :  { %v212_v42 = vmul.f32 0.03125, %v208_v41 }
 0x2b8   :  { %v214_v43 = vadd.f32 1e-05, %v212_v42 }
 0x2b9   :  { %v211_v44 = vpop.xlane.xlu1 %210 }
 0x2ba   :  { %308 = vrsqrt.f32 %v214_v43  ;;  %v213_v45 = vmul.f32 0.03125, %v211_v44 }
 0x2bc   :  { %v215_v46 = vadd.f32 1e-05, %v213_v45 }
 0x2be   :  { %310 = vrsqrt.f32 %v215_v46 }
 0x2c7   :  { %v309_v47 = vpop.eup %308 }
 0x2c8   :  { %v218_v49 = vmul.f32 %v309_v47, %v202_v33 }
 0x2ca   :  { %v227_v51 = vmul.f32 %v264_v48, %v218_v49 }
 0x2cb   :  { %v311_v52 = vpop.eup %310 }
 0x2cc   :  { %v236_v53 = vadd.f32 %v265_v50, %v227_v51  ;;  %v219_v54 = vmul.f32 %v311_v52, %v203_v37 }
 0x2ce   :  { %v268_v55 = vpack.c.bf16 %v236_v53, %v236_v53  ;;  %v228_v56 = vmul.f32 %v264_v48, %v219_v54 }
 0x2d0   :  { %247 = vst.msk [vmem:[%s405_s7] sm:$0xf] %vm246_vm3, %v268_v55  ;;  %v237_v57 = vadd.f32 %v265_v50, %v228_v56 }
 0x2d2   :  { %v269_v58 = vpack.c.bf16 %v237_v57, %v237_v57 }
 0x2d4   :  { %248 = vst.msk [vmem:[%s405_s7 + $0x4] sm:$0xf] %vm246_vm3, %v269_v58 }

// kernel: fwd.17
= control target key start
LH: loop header
LB: loop body
LE: loop exit
PB: predicated region body
PF: predicated region fallthrough
CT: control target
= control target key end

     0   :  { %s1333_s27 = smov 0   ;;  %s1335_s28 = smov 0   ;;  %s1474_s0 = inlined_call_operand.vmem [shape: bf16[2,8,32], index: 0, kind: input, shape index: {}]   ;;  %s1475_s1 = inlined_call_operand.vmem [shape: bf16[2,10,32], index: 1, kind: input, shape index: {}]   ;;  %s1476_s2 = inlined_call_operand.vmem [shape: bf16[2,10,32], index: 2, kind: input, shape index: {}]   ;;  %s1477_s3 = inlined_call_operand.vmem [shape: bf16[2,8,32], index: 3, kind: input, shape index: {}]   ;;  %s1478_s4 = inlined_call_operand.vmem [shape: bf16[32,32], index: 4, kind: input, shape index: {}]   ;;  %s1479_s5 = inlined_call_operand.vmem [shape: f32[1,32], index: 5, kind: input, shape index: {}]   ;;  %s1480_s6 = inlined_call_operand.vmem [shape: f32[1,32], index: 6, kind: input, shape index: {}]   ;;  %s1481_s7 = inlined_call_operand.vmem [shape: f32[1,32], index: 7, kind: input, shape index: {}]   ;;  %s1482_s8 = inlined_call_operand.vmem [shape: bf16[2,8,32], index: 8, kind: output, shape index: {}]  }
   0x1   :  { %s1337_s29 = smov 0  }
   0x2 LB: > { %s30_s30 = sadd.s32 1, %s1274_s28  ;;  %p1097_p0 = scmp.ge.s32.totalorder %s1278_s29, 1  ;;  %s1278_s29 = sphi %s1337_s29, %s18_s29   ;;  %s1274_s28 = sphi %s1335_s28, %s1484_s28   ;;  %s1270_s27 = sphi %s1333_s27, %s1483_s27  }
   0x3   : > { %p32_p1 = scmp.ge.s32.totalorder %s30_s30, 2  ;;  %p314_p2 = scmp.lt.s32.totalorder %s1278_s29, 3 }
   0x5   : > { %s1486_s30 = smov (%p32_p1, %s30_s30), 0  ;;  %p315_p3 = pnand %p1097_p0, %p314_p2 }
   0x6   : > { %p369_p4 = scmp.lt.s32.totalorder (!%p315_p3), %s1270_s27, 1  ;;  %s1282_s17 = smov (!%p315_p3), 120  }
   0x7   : > { %318 = sbr.rel (%p315_p3) target bundleno = 1925 (0x785), region = 52  ;;  %s1283_s18 = smov (!%p315_p3), 112  }
   0x8   : > { %s1284_s19 = smov (!%p315_p3), 104   ;;  %s1285_s23 = smov (!%p315_p3), 8  }
   0x9   : > { %s1286_s24 = smov (!%p315_p3), 16   ;;  %s1287_s10 = smov (!%p315_p3), 24  }
   0xc   : > { %v1280_v0 = vmov 0.0   ;;  %vm1281_vm0 = vmmov 0   ;;  %s1488_s27 = smov (!%p369_p4, %s1270_s27), 1  ;;  %vm411_vm1 = vcmask 64512   ;;  %vm458_vm2 = vcmask 80896  }
   0xd   : > { %1145 = vmatprep.subr.bf16.mxu0 %v1280_v0  ;;  %1147 = vmatprep.mubr.msk.bf16.mxu0 %vm1281_vm0, %v1280_v0  ;;  %s1124_s9 = sshll.u32 %s1488_s27, 3  ;;  %s1366_s13 = sshll.u32 %s1488_s27, 2  ;;  %vm479_vm3 = vcmask 1044480   ;;  %vm641_vm4 = vcmask 130112   ;;  %vm757_vm5 = vcmask 195712   ;;  %vm873_vm6 = vcmask 261312  }
   0xe   : > { %1151 = vmatprep.subr.bf16.mxu1 %v1280_v0  ;;  %1153 = vmatprep.mubr.msk.bf16.mxu1 %vm1281_vm0, %v1280_v0  ;;  %s380_s12 = scalar_lea.vmem %s1475_s1, %s1124_s9  ;;  %s375_s16 = scalar_lea.vmem %s1474_s0, %s1366_s13  ;;  %vm900_vm7 = vcmask 261120   ;;  %vm978_vm8 = vcmask 257024  }
   0xf   : > { %v1233_v1 = vld [vmem:[%s380_s12] sm:$0x1f]   ;;  %s385_s22 = scalar_lea.vmem %s1476_s2, %s1124_s9  ;;  %s392_s14 = scalar_lea.vmem %s1477_s3, %s1366_s13 }
  0x10   : > { %v416_v2 = vsel %vm411_vm1, %v1233_v1, 0  ;;  %v401_v3 = vld [vmem:[%s375_s16] sm:$0xf]  ;;  %529 = vrot.lane.b32.xlu1 %v1233_v1, %s1282_s17 }
  0x11   : > { %1146 = vmatpush3.bf16.xpose.msra.mxu0 %v416_v2  ;;  %v1109_v9 = vcombine.low %v401_v3, %v401_v3  ;;  %v1389_v15 = vld [vmem:[%s385_s22] sm:$0x1f]  }
  0x12   : > { %1163 = vmatprep.subr.bf16.mxu0 %v1280_v0  ;;  %v481_v16 = vsel %vm479_vm3, %v1389_v15, 0 }
  0x13   : > { %1152 = vmatpush3.bf16.msra.mxu1 %v481_v16 }
  0x14   : > { %527 = vrot.lane.b32.xlu1 %v1109_v9, %s1282_s17  ;;  %1157 = vmatprep.subr.bf16.mxu1 %v1280_v0 }
  0x18   : > { %1148 = vmatmul.mubr.msk.bf16.vlgmr.msra.gmra.mxu0 %vm411_vm1, %v401_v3  ;;  %643 = vrot.lane.b32.xlu1 %v1109_v9, %s1283_s18 }
  0x19   : > { %1165 = vmatprep.mubr.msk.bf16.mxu0 %vm1281_vm0, %v1280_v0 }
  0x1c   : > { %761 = vrot.lane.b32.xlu1 %v1233_v1, %s1284_s19 }
  0x20   : > { %759 = vrot.lane.b32.xlu1 %v1109_v9, %s1284_s19 }
  0x82   : > { %v530_v19 = vpop.permute.xlu1 %529 }
  0x83   : > { %v535_v21 = vsel %vm411_vm1, %v530_v19, 0 }
  0x86   : > { %v528_v23 = vpop.permute.xlu1 %527 }
  0x8a   : > { %v644_v25 = vpop.permute.xlu1 %643 }
  0x8e   : > { %v762_v27 = vpop.permute.xlu1 %761 }
  0x8f   : > { %v767_v28 = vsel %vm411_vm1, %v762_v27, 0  ;;  %v1236_v27 = vld [vmem:[%s1478_s4 + $0x8] sm:$0xff]  }
  0x92   : > { %v760_v29 = vpop.permute.xlu1 %759 }
  0xd8   : > { %v452_v4 = vpop.f32.mrf.mxu0 }
  0xd9   : > { %v459_v5 = vsel %vm458_vm2, %v452_v4, -inf }
  0xda   : > { %460 = vmax.xlane.f32.xlu0 %v459_v5  ;;  %v1149_v6 = vpop.f32.mrf.mxu0 }
  0xdc   : > { %v455_v7 = vpop.f32.mrf.mxu0 }
  0xde   : > { %v1150_v8 = vpop.f32.mrf.mxu0 }
 0x163   : > { %v461_v10 = vpop.xlane.xlu0 %460 }
 0x164   : > { %v462_v11 = vsub.f32 %v452_v4, %v461_v10 }
 0x166   : > { %v463_v12 = vmul.f32 1.442695, %v462_v11 }
 0x168   : > { %1238 = vpow2.f32 %v463_v12 }
 0x175   : > { %v1239_v13 = vpop.eup %1238 }
 0x176   : > { %v465_v14 = vsel %vm458_vm2, %v1239_v13, 0.0 }
 0x177   : > { %466 = vadd.xlane.f32.xlu0 %v465_v14 }
 0x18d   : > { %645 = vrot.lane.b32.xlu0 %v1233_v1, %s1283_s18 }
 0x200   : > { %v467_v17 = vpop.xlane.xlu0 %466 }
 0x201   : > { %1240 = vrcp.f32 %v467_v17 }
 0x204   : > { %v646_v24 = vpop.permute.xlu0 %645 }
 0x205   : > { %v651_v26 = vsel %vm411_vm1, %v646_v24, 0 }
 0x20e   : > { %v1241_v18 = vpop.eup %1240 }
 0x20f   : > { %v469_v20 = vmul.f32 %v1241_v18, %v1239_v13 }
 0x211   : > { %v470_v22 = vpack.c.bf16 %v469_v20, %v469_v20 }
 0x213   : > { %1154 = vmatmul.mubr.msk.bf16.vlgmr.msra.gmra.mxu1 %vm458_vm2, %v470_v22 }
 0x214   : > { %1158 = vmatpush3.bf16.xpose.msra.mxu1 %v535_v21  ;;  %1159 = vmatprep.mubr.msk.bf16.mxu1 %vm1281_vm0, %v1280_v0 }
 0x215   : > { %1169 = vmatprep.subr.bf16.mxu1 %v1280_v0 }
 0x21b   : > { %1160 = vmatmul.mubr.msk.bf16.vlgmr.msra.gmra.mxu1 %vm411_vm1, %v528_v23 }
 0x21c   : > { %1170 = vmatpush3.bf16.xpose.msra.mxu1 %v651_v26  ;;  %1171 = vmatprep.mubr.msk.bf16.mxu1 %vm1281_vm0, %v1280_v0 }
 0x21d   : > { %1181 = vmatprep.subr.bf16.mxu1 %v1280_v0 }
 0x223   : > { %1172 = vmatmul.mubr.msk.bf16.vlgmr.msra.gmra.mxu1 %vm411_vm1, %v644_v25 }
 0x224   : > { %1182 = vmatpush3.bf16.xpose.msra.mxu1 %v767_v28  ;;  %1183 = vmatprep.mubr.msk.bf16.mxu1 %vm1281_vm0, %v1280_v0  ;;  %v1237_v28 = vld [vmem:[%s1478_s4] sm:$0xff]  }
 0x225   : > { %1193 = vmatprep.subr.bf16.mxu1 %v1280_v0 }
 0x22b   : > { %1184 = vmatmul.mubr.msk.bf16.vlgmr.msra.gmra.mxu1 %vm411_vm1, %v760_v29 }
 0x22c   : > { %1197 = vmatprep.mubr.msk.bf16.mxu1 %vm1281_vm0, %v1280_v0  ;;  %1194 = vmatpush3.bf16.msra.mxu1 %v1236_v27 }
 0x22d   : > { %1195 = vmatprep.subr.bf16.mxu1 %v1280_v0 }
 0x230   : > { %1196 = vmatpush3.bf16.msra.mxu1 %v1237_v28 }
 0x2d3   : > { %v517_v30 = vpop.f32.mrf.mxu1 }
 0x2d4   : > { %523 = vst.msk [vmem:[#allocation2] sm:$0xff] %vm411_vm1, %v517_v30 }
 0x2d5   : > { %v1155_v31 = vpop.f32.mrf.mxu1 }
 0x2d7   : > { %v520_v32 = vpop.f32.mrf.mxu1 }
 0x2d9   : > { %v1156_v33 = vpop.f32.mrf.mxu1 }
 0x2db   : > { %v571_v34 = vpop.f32.mrf.mxu1 }
 0x2dc   : > { %v577_v35 = vsel %vm458_vm2, %v571_v34, -inf }
 0x2dd   : > { %578 = vmax.xlane.f32.xlu1 %v577_v35  ;;  %v1161_v36 = vpop.f32.mrf.mxu1 }
 0x2df   : > { %v574_v37 = vpop.f32.mrf.mxu1 }
 0x2e0   : > { %v944_v37 = vld [vmem:[%s392_s14] sm:$0xf] }
 0x2e1   : > { %v1162_v38 = vpop.f32.mrf.mxu1 }
 0x2e2   : > { %v1116_v38 = vld [vmem:[%s1479_s5] ss:$0 sm:$0xff] }
 0x2e3   : > { %v687_v39 = vpop.f32.mrf.mxu1 }
 0x2e4   : > { %v693_v40 = vsel %vm458_vm2, %v687_v39, -inf }
 0x2e5   : > { %694 = vmax.xlane.f32.xlu0 %v693_v40  ;;  %v1173_v41 = vpop.f32.mrf.mxu1 }
 0x2e7   : > { %v690_v42 = vpop.f32.mrf.mxu1 }
 0x2e9   : > { %v1174_v43 = vpop.f32.mrf.mxu1 }
 0x2eb   : > { %v803_v44 = vpop.f32.mrf.mxu1 }
 0x2ec   : > { %v809_v45 = vsel %vm458_vm2, %v803_v44, -inf }
 0x2ed   : > { %810 = vmax.xlane.f32.xlu1 %v809_v45  ;;  %v1185_v46 = vpop.f32.mrf.mxu1 }
 0x2ef   : > { %v806_v47 = vpop.f32.mrf.mxu1 }
 0x2f1   : > { %v1186_v48 = vpop.f32.mrf.mxu1 }
 0x366   : > { %v579_v49 = vpop.xlane.xlu1 %578 }
 0x367   : > { %v580_v50 = vsub.f32 %v571_v34, %v579_v49 }
 0x369   : > { %v581_v51 = vmul.f32 1.442695, %v580_v50 }
 0x36b   : > { %1242 = vpow2.f32 %v581_v51 }
 0x36e   : > { %v695_v52 = vpop.xlane.xlu0 %694 }
 0x36f   : > { %v696_v53 = vsub.f32 %v687_v39, %v695_v52  ;;  %v945_v39 = vunpack.c.l.bf16 %v944_v37 }
 0x371   : > { %v697_v54 = vmul.f32 1.442695, %v696_v53 }
 0x373   : > { %1244 = vpow2.f32 %v697_v54 }
 0x376   : > { %v811_v59 = vpop.xlane.xlu1 %810 }
 0x377   : > { %v812_v60 = vsub.f32 %v803_v44, %v811_v59 }
 0x378   : > { %v1243_v55 = vpop.eup %1242 }
 0x379   : > { %v583_v56 = vsel %vm458_vm2, %v1243_v55, 0.0  ;;  %v813_v61 = vmul.f32 1.442695, %v812_v60 }
 0x37a   : > { %584 = vadd.xlane.f32.xlu1 %v583_v56  ;;  %v1120_v56 = vld [vmem:[%s1480_s6] ss:$0 sm:$0xff] }
 0x37b   : > { %1246 = vpow2.f32 %v813_v61 }
 0x380   : > { %v1245_v57 = vpop.eup %1244 }
 0x381   : > { %v699_v58 = vsel %vm458_vm2, %v1245_v57, 0.0 }
 0x382   : > { %700 = vadd.xlane.f32.xlu0 %v699_v58  ;;  %v1121_v58 = vld [vmem:[%s1481_s7] ss:$0 sm:$0xff] }
 0x388   : > { %v1247_v62 = vpop.eup %1246 }
 0x389   : > { %v815_v63 = vsel %vm458_vm2, %v1247_v62, 0.0 }
 0x38b   : > { %705 = vrot.lane.b32.xlu1 %v1389_v15, %s1283_s18 }
 0x398   : > { %589 = vrot.lane.b32.xlu0 %v1389_v15, %s1282_s17 }
 0x3af   : > { %816 = vadd.xlane.f32.xlu1 %v815_v63 }
 0x3c0   : > { %821 = vrot.lane.b32.xlu1 %v1389_v15, %s1284_s19 }
 0x403   : > { %v585_v1 = vpop.xlane.xlu1 %584 }
 0x404   : > { %1248 = vrcp.f32 %v585_v1 }
 0x407   : > { %v706_v7 = vpop.permute.xlu1 %705 }
 0x408   : > { %v711_v9 = vsel %vm479_vm3, %v706_v7, 0 }
 0x40b   : > { %v701_v2 = vpop.xlane.xlu0 %700 }
 0x40c   : > { %1250 = vrcp.f32 %v701_v2 }
 0x40f   : > { %v590_v3 = vpop.permute.xlu0 %589 }
 0x410   : > { %v595_v4 = vsel %vm479_vm3, %v590_v3, 0 }
 0x411   : > { %v1249_v5 = vpop.eup %1248  ;;  %1164 = vmatpush3.bf16.msra.mxu0 %v595_v4 }
 0x412   : > { %1175 = vmatprep.subr.bf16.mxu0 %v1280_v0  ;;  %v587_v6 = vmul.f32 %v1249_v5, %v1243_v55 }
 0x414   : > { %v588_v8 = vpack.c.bf16 %v587_v6, %v587_v6 }
 0x416   : > { %1166 = vmatmul.mubr.msk.bf16.vlgmr.msra.gmra.mxu0 %vm458_vm2, %v588_v8 }
 0x417   : > { %1176 = vmatpush3.bf16.msra.mxu0 %v711_v9  ;;  %1177 = vmatprep.mubr.msk.bf16.mxu0 %vm1281_vm0, %v1280_v0 }
 0x418   : > { %1187 = vmatprep.subr.bf16.mxu0 %v1280_v0 }
 0x419   : > { %v1251_v10 = vpop.eup %1250 }
 0x41a   : > { %v703_v11 = vmul.f32 %v1251_v10, %v1245_v57 }
 0x41c   : > { %v704_v12 = vpack.c.bf16 %v703_v11, %v703_v11 }
 0x41e   : > { %1178 = vmatmul.mubr.msk.bf16.vlgmr.msra.gmra.mxu0 %vm458_vm2, %v704_v12 }
 0x41f   : > { %1189 = vmatprep.mubr.msk.bf16.mxu0 %vm1281_vm0, %v1280_v0 }
 0x438   : > { %v817_v13 = vpop.xlane.xlu1 %816 }
 0x439   : > { %1252 = vrcp.f32 %v817_v13 }
 0x43c   : > { %v822_v14 = vpop.permute.xlu1 %821 }
 0x43d   : > { %v827_v15 = vsel %vm479_vm3, %v822_v14, 0 }
 0x43e   : > { %1188 = vmatpush3.bf16.msra.mxu0 %v827_v15 }
 0x446   : > { %v1253_v16 = vpop.eup %1252 }
 0x447   : > { %v819_v17 = vmul.f32 %v1253_v16, %v1247_v62 }
 0x449   : > { %v820_v18 = vpack.c.bf16 %v819_v17, %v819_v17 }
 0x44b   : > { %1190 = vmatmul.mubr.msk.bf16.vlgmr.msra.gmra.mxu0 %vm458_vm2, %v820_v18 }
 0x4d6   : > { %v631_v19 = vpop.f32.mrf.mxu0 }
 0x4d7   : > { %638 = vrot.lane.b32.xlu0 %v631_v19, %s1285_s23  ;;  %s399_s23 = scalar_lea.vmem %s1482_s8, %s1366_s13 }
 0x4d8   : > { %v1167_v20 = vpop.f32.mrf.mxu0 }
 0x4da   : > { %v634_v21 = vpop.f32.mrf.mxu0 }
 0x4dc   : > { %v1168_v22 = vpop.f32.mrf.mxu0 }
 0x4de   : > { %v747_v23 = vpop.f32.mrf.mxu0 }
 0x4df   : > { %754 = vrot.lane.b32.xlu1 %v747_v23, %s1286_s24 }
 0x4e0   : > { %v1179_v24 = vpop.f32.mrf.mxu0 }
 0x4e2   : > { %v750_v25 = vpop.f32.mrf.mxu0 }
 0x4e4   : > { %v1180_v26 = vpop.f32.mrf.mxu0 }
 0x50b   : > { %v863_v29 = vpop.f32.mrf.mxu0 }
 0x50c   : > { %870 = vrot.lane.b32.xlu0 %v863_v29, %s1287_s10 }
 0x50d   : > { %v1191_v30 = vpop.f32.mrf.mxu0 }
 0x50f   : > { %v866_v31 = vpop.f32.mrf.mxu0 }
 0x511   : > { %v1192_v32 = vpop.f32.mrf.mxu0 }
 0x549   : > { %v639_v33 = vpop.permute.xlu0 %638 }
 0x54a   : > { %642 = vst.msk [vmem:[#allocation2] sm:$0xff] %vm641_vm4, %v639_v33 }
 0x551   : > { %v755_v34 = vpop.permute.xlu1 %754 }
 0x552   : > { %758 = vst.msk [vmem:[#allocation2] sm:$0xff] %vm757_vm5, %v755_v34 }
 0x57e   : > { %v871_v35 = vpop.permute.xlu0 %870 }
 0x57f   : > { %874 = vst.msk [vmem:[#allocation2] sm:$0xff] %vm873_vm6, %v871_v35 }
 0x586   : > { %v875_v36 = vld [vmem:[#allocation2] sm:$0xff] }
 0x587   : > { %v876_v0 = vpack.c.bf16 %v875_v36, %v875_v36 }
 0x589   : > { %1198 = vmatmul.mubr.msk.bf16.vlgmr.msra.gmra.mxu1 %vm900_vm7, %v876_v0 }
 0x649   : > { %v938_v40 = vpop.f32.mrf.mxu1 }
 0x64a   : > { %v939_v41 = vadd.f32 %v1116_v38, %v938_v40 }
 0x64b   : > { %v1199_v42 = vpop.f32.mrf.mxu1 }
 0x64c   : > { %v946_v43 = vadd.f32 %v945_v39, %v939_v41 }
 0x64d   : > { %v941_v44 = vpop.f32.mrf.mxu1 }
 0x64e   : > { %v947_v45 = vsel %vm900_vm7, %v946_v43, 0.0 }
 0x64f   : > { %948 = vadd.xlane.f32.xlu1 %v947_v45  ;;  %v1200_v46 = vpop.f32.mrf.mxu1 }
 0x6d8   : > { %v949_v47 = vpop.xlane.xlu1 %948 }
 0x6d9   : > { %v951_v48 = vmul.f32 0.03125, %v949_v47 }
 0x6db   : > { %v952_v49 = vsub.f32 %v946_v43, %v951_v48 }
 0x6dd   : > { %v953_v50 = vmul.f32 %v952_v49, %v952_v49 }
 0x6df   : > { %v954_v51 = vsel %vm900_vm7, %v953_v50, 0.0 }
 0x6e0   : > { %955 = vadd.xlane.f32.xlu0 %v954_v51 }
 0x769   : > { %v956_v52 = vpop.xlane.xlu0 %955 }
 0x76a   : > { %v957_v53 = vmul.f32 0.03125, %v956_v52 }
 0x76c   : > { %v958_v54 = vadd.f32 1e-05, %v957_v53 }
 0x76e   : > { %1254 = vrsqrt.f32 %v958_v54 }
 0x77b   : > { %v1255_v55 = vpop.eup %1254 }
 0x77c   : > { %v960_v57 = vmul.f32 %v1255_v55, %v952_v49 }
 0x77e   : > { %v968_v59 = vmul.f32 %v1120_v56, %v960_v57 }
 0x780   : > { %v976_v60 = vadd.f32 %v1121_v58, %v968_v59 }
 0x782   : > { %v977_v61 = vpack.c.bf16 %v976_v60, %v976_v60 }
 0x784   : > { %979 = vst.msk [vmem:[%s399_s23] sm:$0xf] %vm978_vm8, %v977_v61 }
 0x785 PF: > { %s18_s29 = sadd.s32 1, %s1278_s29   ;;  %s1483_s27 = smov %s1274_s28 }
 0x786   : > { %p15_p5 = scmp.ge.s32.totalorder %s18_s29, 4   ;;  %s1484_s28 = smov %s1486_s30 }
 0x788   :  { %17 = sbr.rel (!%p15_p5) target bundleno = 2 (0x2), region = 91 }

// kernel: fwd.25
= control target key start
LH: loop header
LB: loop body
LE: loop exit
PB: predicated region body
PF: predicated region fallthrough
CT: control target
= control target key end

     0   :  { %v199_v1 = vmov 0.0   ;;  %vm55_vm0 = vcmask 261120   ;;  %vm200_vm1 = vmmov 0   ;;  %s250_s0 = inlined_call_operand.vmem [shape: bf16[16,32], index: 0, kind: input, shape index: {}]   ;;  %s251_s1 = inlined_call_operand.vmem [shape: bf16[50,32], index: 1, kind: input, shape index: {}]   ;;  %s252_s2 = inlined_call_operand.vmem [shape: f32[1,50], index: 2, kind: input, shape index: {}]   ;;  %s253_s3 = inlined_call_operand.hbm [shape: bf16[16,50], index: 3, kind: output, shape index: {}]  }
   0x1   :  { %v172_v0 = vld [vmem:[%s251_s1 + $0x18] ss:$0 sps:$4 sm:$0x11]   ;;  %155 = vmatprep.subr.bf16.mxu0 %v199_v1  ;;  %v173_v3 = vld [vmem:[%s251_s1 + $0x10] sm:$0xff]   ;;  %163 = vmatprep.mubr.msk.bf16.mxu0 %vm200_vm1, %v199_v1 }
   0x2   :  { %v69_v2 = vsel %vm55_vm0, %v172_v0, 0 }
   0x3   :  { %156 = vmatpush3.bf16.xpose.msra.mxu0 %v69_v2 }
   0x4   :  { %157 = vmatprep.subr.bf16.mxu0 %v199_v1 }
   0x5   :  { %8 = vsyncpa [#allocation3], 0  ;;  %v66_v4 = vsel %vm55_vm0, %v173_v3, 0  ;;  %v174_v5 = vld [vmem:[%s251_s1 + $0x8] sm:$0xff]   ;;  %v175_v7 = vld [vmem:[%s251_s1] sm:$0xff]   ;;  %vm120_vm2 = vcmask 404480  }
   0x6   :  { %v63_v6 = vsel %vm55_vm0, %v174_v5, 0  ;;  %v60_v8 = vsel %vm55_vm0, %v175_v7, 0  ;;  %v176_v9 = vld [vmem:[%s250_s0] sm:$0xff]   ;;  %s201_s24 = smov [#allocation2]  }
   0x7   :  { %v139_v10 = vld [vmem:[%s252_s2] ss:$0 sm:$0xff]  ;;  %s128_s1 = sshll.u32 %s201_s24, 4  ;;  %s129_s1 = int_to_ptr.vmem [resolvable:$true] %s128_s1 }
   0x8   :  { %s177_s0 = scalar_lea.vmem %s129_s1, 128  ;;  %p182_p1 = scmp.lt.s32.totalorder %s129_s1, %s129_s1 }
   0x9   :  { %p178_p0 = scmp.ne.s32.totalorder %s129_s1, %s177_s0  ;;  %p183_p2 = scmp.lt.s32.totalorder %s177_s0, %s177_s0 }
   0xb   :  { %158 = vmatpush3.bf16.xpose.msra.mxu0 %v66_v4  ;;  %p184_p3 = por %p183_p2, %p182_p1 }
   0xc   :  { %159 = vmatprep.subr.bf16.mxu0 %v199_v1 }
   0xd   :  { %p185_p4 = pnand %p184_p3, %p178_p0 }
  0x13   :  { %160 = vmatpush3.bf16.xpose.msra.mxu0 %v63_v6 }
  0x14   :  { %161 = vmatprep.subr.bf16.mxu0 %v199_v1 }
  0x1b   :  { %162 = vmatpush3.bf16.xpose.msra.mxu0 %v60_v8 }
  0x22   :  { %164 = vmatmul.mubr.msk.bf16.vlgmr.msra.gmra.mxu0 %vm55_vm0, %v176_v9 }
  0xe2   :  { %v105_v11 = vpop.f32.mrf.mxu0 }
  0xe3   :  { %v106_v12 = vadd.f32 %v139_v10, %v105_v11 }
  0xe4   :  { %v165_v13 = vpop.f32.mrf.mxu0 }
  0xe5   :  { %v148_v14 = vpack.c.bf16 %v106_v12, %v106_v12 }
  0xe6   :  { %v108_v15 = vpop.f32.mrf.mxu0 }
  0xe7   :  { %121 = vst.msk [vmem:[#allocation2] sm:$0xf] %vm120_vm2, %v148_v14  ;;  %v109_v16 = vadd.f32 %v139_v10, %v108_v15 }
  0xe8   :  { %v166_v17 = vpop.f32.mrf.mxu0 }
  0xe9   :  { %v149_v18 = vpack.c.bf16 %v109_v16, %v109_v16 }
  0xeb   :  { %122 = vst.msk [vmem:[#allocation2 + $0x4] sm:$0xf] %vm120_vm2, %v149_v18 }
  0xec   :  { %188 = shalt.err (!%p185_p4)
}
  0xed   :  { %s202_s2 = smov 64   ;;  %s203_s25 = smov 4  }
  0xee   :  { %134 = dma.vmem_to_hbm [thread:$0]  %s129_s1, 128, %s253_s3, [#allocation3], %s202_s2, %s202_s2, %s203_s25  }
  0xef   :  { %197 = dma.done.wait [#allocation3], 128  }
  0xf0   :  { %198 = vsyncadd [#allocation3], 4294967168 }
  0xf1   :  { %138 = vsyncpa [#allocation3], 1 }

</bundles_post_ra>
